<compile_context>
chip_gen: v7x
topology: tpu7x:2x2x1
jax: 0.10.0
libtpu: 0.0.40
codegen_flags: <defaults>
</compile_context>

<pallas_src>
import functools
import math

import jax
import jax.numpy as jnp
from jax.experimental import pallas as pl
from jax.experimental.pallas import tpu as pltpu


# --------------------------------------------------------------------------
# Fused STCBlock kernel (one sample per grid step, everything in VMEM)
# --------------------------------------------------------------------------
def _stc_block_kernel(x_ref, wg_ref, p1_ref, c1_ref, wt_ref, c2_ref,
                      p2_ref, c3_ref, o_ref, gv_ref, gf_ref, xf_ref, *, dil):
    _, C, T, V = x_ref.shape
    tv = T * V
    tk = wt_ref.shape[0]
    pad = (tk - 1) * dil // 2                      # 'same' padding (odd tk)

    # --- SPGConv depthwise graph conv: einsum('ctv,cvw->ctw')   [MXU, bf16]
    x = x_ref[0]                                   # (C, T, V) f32
    g = jnp.einsum("ctv,cvw->ctw", x.astype(jnp.bfloat16), wg_ref[...],
                   preferred_element_type=jnp.float32)   # (C, T, V) f32
    gv_ref[...] = g

    # --- relayout to lane-dense (C, T*V) through VMEM refs (no jnp.reshape
    #     of tiled dims); also flatten x once for the identity residual.
    for t in range(T):                             # static trip count
        gf_ref[:, t * V:(t + 1) * V] = gv_ref[:, t, :]
        xf_ref[:, t * V:(t + 1) * V] = x_ref[0, :, t, :]

    # --- pointwise C->D (BN_gcn, BN_t1 folded) + ReLU           [MXU, bf16]
    z = jnp.dot(p1_ref[...], gf_ref[...].astype(jnp.bfloat16),
                preferred_element_type=jnp.float32) + c1_ref[...]
    z = jnp.maximum(z, 0.0)                        # (D, T*V) f32

    # --- depthwise temporal conv: tk-tap shift-and-add stencil along lanes.
    # A shift of `off` frames in T is a shift of off*V lanes; zero padding ==
    # masking the lanes that wrapped (one compare per nonzero tap).
    lane = jax.lax.broadcasted_iota(jnp.int32, z.shape, 1)
    acc = jnp.zeros_like(z)
    for k in range(tk):                            # static, tiny trip count
        off = (k * dil - pad) * V
        if off == 0:
            shifted = z
        elif off > 0:
            shifted = pltpu.roll(z, shift=(-off) % tv, axis=1)   # XLU rotate
            shifted = jnp.where(lane < tv - off, shifted, 0.0)
        else:
            shifted = pltpu.roll(z, shift=(-off) % tv, axis=1)
            shifted = jnp.where(lane >= -off, shifted, 0.0)
        acc = acc + wt_ref[k] * shifted            # wt_ref[k]: (D, 1) tap
    y = jnp.maximum(acc + c2_ref[...], 0.0)        # BN_t2 (folded) + ReLU

    # --- pointwise D->E (BN_t3 folded) + identity residual + final ReLU
    u = jnp.dot(p2_ref[...], y.astype(jnp.bfloat16),
                preferred_element_type=jnp.float32) + c3_ref[...]
    o_ref[0] = jnp.maximum(u + xf_ref[...], 0.0)


# --------------------------------------------------------------------------
# Wrapper: BN folding + pallas_call
# --------------------------------------------------------------------------
def fold_params(p):
    """Precompute dw*A and fold all inference-mode BatchNorms into weights."""
    sg, bg = p["bn_gcn_scale"], p["bn_gcn_shift"]
    s1, b1 = p["bn_t1_scale"], p["bn_t1_shift"]
    s2, b2 = p["bn_t2_scale"], p["bn_t2_shift"]
    s3, b3 = p["bn_t3_scale"], p["bn_t3_shift"]

    wg = p["dw_gcn_weight"] * p["A"]                   # (C, V, V)
    pw = p["pw_gcn_weight"]                            # (C, D)
    p1 = s1[:, None] * pw.T * sg[None, :]              # (D, C)
    c1 = (s1 * (pw.T @ bg) + b1)[:, None]              # (D, 1)
    wt = (s2[:, None] * p["w_dw_t"]).T[:, :, None]     # (tk, D, 1)
    c2 = b2[:, None]                                   # (D, 1)
    p2 = s3[:, None] * p["w_pw_t"]                     # (E, D)
    c3 = b3[:, None]                                   # (E, 1)
    return wg, p1, c1, wt, c2, p2, c3


def stc_block_forward(x, params, tk, dil):
    N, C, T, V = x.shape
    assert tk % 2 == 1, "temporal kernel size must be odd ('same' padding)"
    wg, p1, c1, wt, c2, p2, c3 = fold_params(params)
    D, E, TV = p1.shape[0], p2.shape[0], T * V
    assert E == C, "identity residual path requires in_channels == out_channels"

    # MXU-side weights carried in bf16 (halves their DMA, single-pass MXU).
    wg16 = wg.astype(jnp.bfloat16)
    p1_16 = p1.astype(jnp.bfloat16)
    p2_16 = p2.astype(jnp.bfloat16)

    flops = 2 * N * (C * T * V * V + D * C * TV + D * TV * tk + E * D * TV)
    bytes_accessed = (4 * N * TV * (C + E)                         # x in, out
                      + 2 * (wg16.size + p1_16.size + p2_16.size)  # bf16 wts
                      + 4 * (c1.size + c2.size + c3.size + wt.size))

    kernel = functools.partial(_stc_block_kernel, dil=dil)
    out_flat = pl.pallas_call(
        kernel,
        out_shape=jax.ShapeDtypeStruct((N, E, TV), jnp.float32),
        grid=(N,),
        in_specs=[
            pl.BlockSpec((1, C, T, V), lambda n: (n, 0, 0, 0)),  # x (sole HBM read)
            pl.BlockSpec((C, V, V), lambda n: (0, 0, 0)),        # dw*A  (bf16)
            pl.BlockSpec((D, C), lambda n: (0, 0)),              # folded pw1 (bf16)
            pl.BlockSpec((D, 1), lambda n: (0, 0)),              # folded bias1
            pl.BlockSpec((tk, D, 1), lambda n: (0, 0, 0)),       # folded taps
            pl.BlockSpec((D, 1), lambda n: (0, 0)),              # folded bias2
            pl.BlockSpec((E, D), lambda n: (0, 0)),              # folded pw2 (bf16)
            pl.BlockSpec((E, 1), lambda n: (0, 0)),              # folded bias3
        ],
        out_specs=pl.BlockSpec((1, E, TV), lambda n: (n, 0, 0)),  # lane-dense
        scratch_shapes=[
            pltpu.VMEM((C, T, V), jnp.float32),   # graph-conv result
            pltpu.VMEM((C, TV), jnp.float32),     # graph-conv, lane-dense
            pltpu.VMEM((C, TV), jnp.float32),     # x, lane-dense (residual)
        ],
        compiler_params=pltpu.CompilerParams(dimension_semantics=("parallel",)),
        cost_estimate=pl.CostEstimate(flops=int(flops), transcendentals=0,
                                      bytes_accessed=int(bytes_accessed)),
    )(x, wg16, p1_16, c1, wt, c2, p2_16, c3)
    return out_flat.reshape(N, E, T, V)            # free contiguous reshape


# --------------------------------------------------------------------------
# Deterministic parameter init (shapes follow the PyTorch module __init__)
# --------------------------------------------------------------------------
def init_params(key, C, D, V, tk):
    keys = jax.random.split(key, 10)
    stdv = 1.0 / math.sqrt(C * 1)  # SPGConv spatial kernel_size = 1

    A = jax.random.uniform(keys[0], (1, V, V), jnp.float32, 0.0, 1.0)
    A = A / jnp.sum(A, axis=-1, keepdims=True)         # row-normalised adjacency

    def bn(k, n):
        kg, kb, km, kv = jax.random.split(k, 4)
        gamma = jax.random.uniform(kg, (n,), jnp.float32, 0.5, 1.5)
        beta = jax.random.uniform(kb, (n,), jnp.float32, -0.1, 0.1)
        mean = jax.random.uniform(km, (n,), jnp.float32, -0.1, 0.1)
        var = jax.random.uniform(kv, (n,), jnp.float32, 0.5, 1.5)
        scale = gamma / jnp.sqrt(var + 1e-5)
        return scale, beta - mean * scale

    bn_gcn_s, bn_gcn_b = bn(keys[3], C)
    bn_t1_s, bn_t1_b = bn(keys[4], D)
    bn_t2_s, bn_t2_b = bn(keys[5], D)
    bn_t3_s, bn_t3_b = bn(keys[6], D)

    return {
        "A": A,
        "dw_gcn_weight": jax.random.uniform(keys[1], (C, V, V), jnp.float32, -stdv, stdv),
        "pw_gcn_weight": jax.random.uniform(keys[2], (C, D), jnp.float32, -stdv, stdv),
        "bn_gcn_scale": bn_gcn_s, "bn_gcn_shift": bn_gcn_b,
        "bn_t1_scale": bn_t1_s, "bn_t1_shift": bn_t1_b,
        # depthwise temporal conv weight: PyTorch (D,1,tk,1) -> (D,tk)
        "w_dw_t": jax.random.uniform(keys[7], (D, tk), jnp.float32,
                                     -1.0 / math.sqrt(tk), 1.0 / math.sqrt(tk)),
        "bn_t2_scale": bn_t2_s, "bn_t2_shift": bn_t2_b,
        # pointwise conv weight: PyTorch (E,D,1,1) -> (E,D)
        "w_pw_t": jax.random.uniform(keys[8], (D, D), jnp.float32,
                                     -1.0 / math.sqrt(D), 1.0 / math.sqrt(D)),
        "bn_t3_scale": bn_t3_s, "bn_t3_shift": bn_t3_b,
    }


# --------------------------------------------------------------------------
# Pure-JAX reference (independent formulation) for validation
# --------------------------------------------------------------------------
def stc_block_reference(x, p, tk, dil):
    N, C, T, V = x.shape
    prec = jax.lax.Precision.HIGHEST
    W = p["dw_gcn_weight"] * p["A"]
    h = jnp.einsum("nctv,cvw->nctw", x, W, precision=prec)
    h = h * p["bn_gcn_scale"][None, :, None, None] + p["bn_gcn_shift"][None, :, None, None]
    h = jnp.einsum("nctw,cd->ndtw", h, p["pw_gcn_weight"], precision=prec)
    h = h * p["bn_t1_scale"][None, :, None, None] + p["bn_t1_shift"][None, :, None, None]
    h = jnp.maximum(h, 0.0)
    pad = (tk - 1) * dil // 2
    hp = jnp.pad(h, ((0, 0), (0, 0), (pad, pad), (0, 0)))
    y = jnp.zeros_like(h)
    for k in range(tk):
        y = y + p["w_dw_t"][None, :, k, None, None] * hp[:, :, k * dil:k * dil + T, :]
    y = y * p["bn_t2_scale"][None, :, None, None] + p["bn_t2_shift"][None, :, None, None]
    y = jnp.maximum(y, 0.0)
    y = jnp.einsum("ndtv,ed->netv", y, p["w_pw_t"], precision=prec)
    y = y * p["bn_t3_scale"][None, :, None, None] + p["bn_t3_shift"][None, :, None, None]
    return jnp.maximum(y + x, 0.0)


if __name__ == "__main__":
    N, C, T, V = 2, 8, 16, 16         # batch, channels (in==out), time, vertices
    tk, dil = 3, 1                    # temporal kernel size, dilation

    key = jax.random.PRNGKey(0)
    kx, kp = jax.random.split(key)
    x = jax.random.normal(kx, (N, C, T, V), jnp.float32)
    params = init_params(kp, C, C, V, tk)

    out = stc_block_forward(x, params, tk=tk, dil=dil)
    out = jax.block_until_ready(out)

    ref = stc_block_reference(x, params, tk, dil)
    assert out.shape == (N, C, T, V)
    # Kernel matmuls use bf16 operands with f32 accumulation vs HIGHEST in the
    # reference; tolerance covers the bf16 rounding at these sizes.
    if not bool(jnp.allclose(out, ref, atol=3e-2, rtol=3e-2)):
        raise AssertionError(
            f"mismatch vs reference, max abs err = {float(jnp.max(jnp.abs(out - ref)))}")
    print("KERNEL_OK")
</pallas_src>

<mosaic_0001>
module attributes {stable_mosaic.version = 11 : i64} {
  func.func @_stc_block_kernel(%arg0: i32, %arg1: memref<1x8x16x16xf32, #tpu.memory_space<vmem>>, %arg2: memref<8x16x16xbf16, #tpu.memory_space<vmem>>, %arg3: memref<8x8xbf16, #tpu.memory_space<vmem>>, %arg4: memref<8x1xf32, #tpu.memory_space<vmem>>, %arg5: memref<3x8x1xf32, #tpu.memory_space<vmem>>, %arg6: memref<8x1xf32, #tpu.memory_space<vmem>>, %arg7: memref<8x8xbf16, #tpu.memory_space<vmem>>, %arg8: memref<8x1xf32, #tpu.memory_space<vmem>>, %arg9: memref<1x8x256xf32, #tpu.memory_space<vmem>>, %arg10: memref<8x16x16xf32, #tpu.memory_space<vmem>>, %arg11: memref<8x256xf32, #tpu.memory_space<vmem>>, %arg12: memref<8x256xf32, #tpu.memory_space<vmem>>) attributes {dimension_semantics = [#tpu.dimension_semantics<parallel>], iteration_bounds = array<i64: 2>, scalar_prefetch = 0 : i64, scratch_operands = 3 : i64, tpu.core_type = #tpu.core_type<tc>, window_params = [{transform_indices = @transform_0, window_bounds = array<i64: 1, 8, 16, 16>}, {pipeline_mode = #tpu.pipeline_mode<synchronous>, transform_indices = @transform_1, window_bounds = array<i64: 8, 16, 16>}, {pipeline_mode = #tpu.pipeline_mode<synchronous>, transform_indices = @transform_2, window_bounds = array<i64: 8, 8>}, {pipeline_mode = #tpu.pipeline_mode<synchronous>, transform_indices = @transform_3, window_bounds = array<i64: 8, 1>}, {pipeline_mode = #tpu.pipeline_mode<synchronous>, transform_indices = @transform_4, window_bounds = array<i64: 3, 8, 1>}, {pipeline_mode = #tpu.pipeline_mode<synchronous>, transform_indices = @transform_5, window_bounds = array<i64: 8, 1>}, {pipeline_mode = #tpu.pipeline_mode<synchronous>, transform_indices = @transform_6, window_bounds = array<i64: 8, 8>}, {pipeline_mode = #tpu.pipeline_mode<synchronous>, transform_indices = @transform_7, window_bounds = array<i64: 8, 1>}, {transform_indices = @transform_8, window_bounds = array<i64: 1, 8, 256>}]} {
    %c0 = arith.constant 0 : index
    %c0_0 = arith.constant 0 : index
    %c0_1 = arith.constant 0 : index
    %c0_2 = arith.constant 0 : index
    %0 = vector.load %arg1[%c0, %c0_0, %c0_1, %c0_2] : memref<1x8x16x16xf32, #tpu.memory_space<vmem>>, vector<1x8x16x16xf32>
    %1 = vector.shape_cast %0 : vector<1x8x16x16xf32> to vector<8x16x16xf32>
    %2 = arith.truncf %1 : vector<8x16x16xf32> to vector<8x16x16xbf16>
    %c0_3 = arith.constant 0 : index
    %c0_4 = arith.constant 0 : index
    %c0_5 = arith.constant 0 : index
    %3 = vector.load %arg2[%c0_3, %c0_4, %c0_5] : memref<8x16x16xbf16, #tpu.memory_space<vmem>>, vector<8x16x16xbf16>
    "tpu.trace_start"() <{level = 10 : i32, message = "ctv,cvw->ctw"}> : () -> ()
    %cst = arith.constant dense<0.000000e+00> : vector<8x16x16xf32>
    %4 = tpu.matmul %2, %3, %cst {dimension_numbers = #tpu.dot_dimension_numbers<[2], [1], [1], [2], [0, 0, 0, 1, 1, 2], [0], [0]>} : vector<8x16x16xbf16>, vector<8x16x16xbf16>, vector<8x16x16xf32> -> vector<8x16x16xf32>
    "tpu.trace_stop"() : () -> ()
    %c0_6 = arith.constant 0 : index
    %c0_7 = arith.constant 0 : index
    %c0_8 = arith.constant 0 : index
    %5 = vector.load %arg10[%c0_6, %c0_7, %c0_8] : memref<8x16x16xf32, #tpu.memory_space<vmem>>, vector<8x16x16xf32>
    tpu.vector_store %arg10[%c0_6, %c0_7, %c0_8], %4 {strides = array<i32>} : memref<8x16x16xf32, #tpu.memory_space<vmem>>, vector<8x16x16xf32>,
    %c0_9 = arith.constant 0 : index
    %c0_10 = arith.constant 0 : index
    %c0_11 = arith.constant 0 : index
    %6 = vector.load %arg10[%c0_9, %c0_10, %c0_11] : memref<8x16x16xf32, #tpu.memory_space<vmem>>, vector<8x1x16xf32>
    %7 = vector.shape_cast %6 : vector<8x1x16xf32> to vector<8x16xf32>
    %c0_12 = arith.constant 0 : index
    %c0_13 = arith.constant 0 : index
    %8 = vector.load %arg11[%c0_12, %c0_13] : memref<8x256xf32, #tpu.memory_space<vmem>>, vector<8x16xf32>
    tpu.vector_store %arg11[%c0_12, %c0_13], %7 {strides = array<i32>} : memref<8x256xf32, #tpu.memory_space<vmem>>, vector<8x16xf32>,
    %c0_14 = arith.constant 0 : index
    %c0_15 = arith.constant 0 : index
    %c0_16 = arith.constant 0 : index
    %c0_17 = arith.constant 0 : index
    %9 = vector.load %arg1[%c0_14, %c0_15, %c0_16, %c0_17] : memref<1x8x16x16xf32, #tpu.memory_space<vmem>>, vector<1x8x1x16xf32>
    %10 = vector.shape_cast %9 : vector<1x8x1x16xf32> to vector<8x16xf32>
    %c0_18 = arith.constant 0 : index
    %c0_19 = arith.constant 0 : index
    %11 = vector.load %arg12[%c0_18, %c0_19] : memref<8x256xf32, #tpu.memory_space<vmem>>, vector<8x16xf32>
    tpu.vector_store %arg12[%c0_18, %c0_19], %10 {strides = array<i32>} : memref<8x256xf32, #tpu.memory_space<vmem>>, vector<8x16xf32>,
    %c0_20 = arith.constant 0 : index
    %c1 = arith.constant 1 : index
    %c0_21 = arith.constant 0 : index
    %12 = vector.load %arg10[%c0_20, %c1, %c0_21] : memref<8x16x16xf32, #tpu.memory_space<vmem>>, vector<8x1x16xf32>
    %13 = vector.shape_cast %12 : vector<8x1x16xf32> to vector<8x16xf32>
    %c0_22 = arith.constant 0 : index
    %c16 = arith.constant 16 : index
    %14 = vector.load %arg11[%c0_22, %c16] : memref<8x256xf32, #tpu.memory_space<vmem>>, vector<8x16xf32>
    tpu.vector_store %arg11[%c0_22, %c16], %13 {strides = array<i32>} : memref<8x256xf32, #tpu.memory_space<vmem>>, vector<8x16xf32>,
    %c0_23 = arith.constant 0 : index
    %c0_24 = arith.constant 0 : index
    %c1_25 = arith.constant 1 : index
    %c0_26 = arith.constant 0 : index
    %15 = vector.load %arg1[%c0_23, %c0_24, %c1_25, %c0_26] : memref<1x8x16x16xf32, #tpu.memory_space<vmem>>, vector<1x8x1x16xf32>
    %16 = vector.shape_cast %15 : vector<1x8x1x16xf32> to vector<8x16xf32>
    %c0_27 = arith.constant 0 : index
    %c16_28 = arith.constant 16 : index
    %17 = vector.load %arg12[%c0_27, %c16_28] : memref<8x256xf32, #tpu.memory_space<vmem>>, vector<8x16xf32>
    tpu.vector_store %arg12[%c0_27, %c16_28], %16 {strides = array<i32>} : memref<8x256xf32, #tpu.memory_space<vmem>>, vector<8x16xf32>,
    %c0_29 = arith.constant 0 : index
    %c2 = arith.constant 2 : index
    %c0_30 = arith.constant 0 : index
    %18 = vector.load %arg10[%c0_29, %c2, %c0_30] : memref<8x16x16xf32, #tpu.memory_space<vmem>>, vector<8x1x16xf32>
    %19 = vector.shape_cast %18 : vector<8x1x16xf32> to vector<8x16xf32>
    %c0_31 = arith.constant 0 : index
    %c32 = arith.constant 32 : index
    %20 = vector.load %arg11[%c0_31, %c32] : memref<8x256xf32, #tpu.memory_space<vmem>>, vector<8x16xf32>
    tpu.vector_store %arg11[%c0_31, %c32], %19 {strides = array<i32>} : memref<8x256xf32, #tpu.memory_space<vmem>>, vector<8x16xf32>,
    %c0_32 = arith.constant 0 : index
    %c0_33 = arith.constant 0 : index
    %c2_34 = arith.constant 2 : index
    %c0_35 = arith.constant 0 : index
    %21 = vector.load %arg1[%c0_32, %c0_33, %c2_34, %c0_35] : memref<1x8x16x16xf32, #tpu.memory_space<vmem>>, vector<1x8x1x16xf32>
    %22 = vector.shape_cast %21 : vector<1x8x1x16xf32> to vector<8x16xf32>
    %c0_36 = arith.constant 0 : index
    %c32_37 = arith.constant 32 : index
    %23 = vector.load %arg12[%c0_36, %c32_37] : memref<8x256xf32, #tpu.memory_space<vmem>>, vector<8x16xf32>
    tpu.vector_store %arg12[%c0_36, %c32_37], %22 {strides = array<i32>} : memref<8x256xf32, #tpu.memory_space<vmem>>, vector<8x16xf32>,
    %c0_38 = arith.constant 0 : index
    %c3 = arith.constant 3 : index
    %c0_39 = arith.constant 0 : index
    %24 = vector.load %arg10[%c0_38, %c3, %c0_39] : memref<8x16x16xf32, #tpu.memory_space<vmem>>, vector<8x1x16xf32>
    %25 = vector.shape_cast %24 : vector<8x1x16xf32> to vector<8x16xf32>
    %c0_40 = arith.constant 0 : index
    %c48 = arith.constant 48 : index
    %26 = vector.load %arg11[%c0_40, %c48] : memref<8x256xf32, #tpu.memory_space<vmem>>, vector<8x16xf32>
    tpu.vector_store %arg11[%c0_40, %c48], %25 {strides = array<i32>} : memref<8x256xf32, #tpu.memory_space<vmem>>, vector<8x16xf32>,
    %c0_41 = arith.constant 0 : index
    %c0_42 = arith.constant 0 : index
    %c3_43 = arith.constant 3 : index
    %c0_44 = arith.constant 0 : index
    %27 = vector.load %arg1[%c0_41, %c0_42, %c3_43, %c0_44] : memref<1x8x16x16xf32, #tpu.memory_space<vmem>>, vector<1x8x1x16xf32>
    %28 = vector.shape_cast %27 : vector<1x8x1x16xf32> to vector<8x16xf32>
    %c0_45 = arith.constant 0 : index
    %c48_46 = arith.constant 48 : index
    %29 = vector.load %arg12[%c0_45, %c48_46] : memref<8x256xf32, #tpu.memory_space<vmem>>, vector<8x16xf32>
    tpu.vector_store %arg12[%c0_45, %c48_46], %28 {strides = array<i32>} : memref<8x256xf32, #tpu.memory_space<vmem>>, vector<8x16xf32>,
    %c0_47 = arith.constant 0 : index
    %c4 = arith.constant 4 : index
    %c0_48 = arith.constant 0 : index
    %30 = vector.load %arg10[%c0_47, %c4, %c0_48] : memref<8x16x16xf32, #tpu.memory_space<vmem>>, vector<8x1x16xf32>
    %31 = vector.shape_cast %30 : vector<8x1x16xf32> to vector<8x16xf32>
    %c0_49 = arith.constant 0 : index
    %c64 = arith.constant 64 : index
    %32 = vector.load %arg11[%c0_49, %c64] : memref<8x256xf32, #tpu.memory_space<vmem>>, vector<8x16xf32>
    tpu.vector_store %arg11[%c0_49, %c64], %31 {strides = array<i32>} : memref<8x256xf32, #tpu.memory_space<vmem>>, vector<8x16xf32>,
    %c0_50 = arith.constant 0 : index
    %c0_51 = arith.constant 0 : index
    %c4_52 = arith.constant 4 : index
    %c0_53 = arith.constant 0 : index
    %33 = vector.load %arg1[%c0_50, %c0_51, %c4_52, %c0_53] : memref<1x8x16x16xf32, #tpu.memory_space<vmem>>, vector<1x8x1x16xf32>
    %34 = vector.shape_cast %33 : vector<1x8x1x16xf32> to vector<8x16xf32>
    %c0_54 = arith.constant 0 : index
    %c64_55 = arith.constant 64 : index
    %35 = vector.load %arg12[%c0_54, %c64_55] : memref<8x256xf32, #tpu.memory_space<vmem>>, vector<8x16xf32>
    tpu.vector_store %arg12[%c0_54, %c64_55], %34 {strides = array<i32>} : memref<8x256xf32, #tpu.memory_space<vmem>>, vector<8x16xf32>,
    %c0_56 = arith.constant 0 : index
    %c5 = arith.constant 5 : index
    %c0_57 = arith.constant 0 : index
    %36 = vector.load %arg10[%c0_56, %c5, %c0_57] : memref<8x16x16xf32, #tpu.memory_space<vmem>>, vector<8x1x16xf32>
    %37 = vector.shape_cast %36 : vector<8x1x16xf32> to vector<8x16xf32>
    %c0_58 = arith.constant 0 : index
    %c80 = arith.constant 80 : index
    %38 = vector.load %arg11[%c0_58, %c80] : memref<8x256xf32, #tpu.memory_space<vmem>>, vector<8x16xf32>
    tpu.vector_store %arg11[%c0_58, %c80], %37 {strides = array<i32>} : memref<8x256xf32, #tpu.memory_space<vmem>>, vector<8x16xf32>,
    %c0_59 = arith.constant 0 : index
    %c0_60 = arith.constant 0 : index
    %c5_61 = arith.constant 5 : index
    %c0_62 = arith.constant 0 : index
    %39 = vector.load %arg1[%c0_59, %c0_60, %c5_61, %c0_62] : memref<1x8x16x16xf32, #tpu.memory_space<vmem>>, vector<1x8x1x16xf32>
    %40 = vector.shape_cast %39 : vector<1x8x1x16xf32> to vector<8x16xf32>
    %c0_63 = arith.constant 0 : index
    %c80_64 = arith.constant 80 : index
    %41 = vector.load %arg12[%c0_63, %c80_64] : memref<8x256xf32, #tpu.memory_space<vmem>>, vector<8x16xf32>
    tpu.vector_store %arg12[%c0_63, %c80_64], %40 {strides = array<i32>} : memref<8x256xf32, #tpu.memory_space<vmem>>, vector<8x16xf32>,
    %c0_65 = arith.constant 0 : index
    %c6 = arith.constant 6 : index
    %c0_66 = arith.constant 0 : index
    %42 = vector.load %arg10[%c0_65, %c6, %c0_66] : memref<8x16x16xf32, #tpu.memory_space<vmem>>, vector<8x1x16xf32>
    %43 = vector.shape_cast %42 : vector<8x1x16xf32> to vector<8x16xf32>
    %c0_67 = arith.constant 0 : index
    %c96 = arith.constant 96 : index
    %44 = vector.load %arg11[%c0_67, %c96] : memref<8x256xf32, #tpu.memory_space<vmem>>, vector<8x16xf32>
    tpu.vector_store %arg11[%c0_67, %c96], %43 {strides = array<i32>} : memref<8x256xf32, #tpu.memory_space<vmem>>, vector<8x16xf32>,
    %c0_68 = arith.constant 0 : index
    %c0_69 = arith.constant 0 : index
    %c6_70 = arith.constant 6 : index
    %c0_71 = arith.constant 0 : index
    %45 = vector.load %arg1[%c0_68, %c0_69, %c6_70, %c0_71] : memref<1x8x16x16xf32, #tpu.memory_space<vmem>>, vector<1x8x1x16xf32>
    %46 = vector.shape_cast %45 : vector<1x8x1x16xf32> to vector<8x16xf32>
    %c0_72 = arith.constant 0 : index
    %c96_73 = arith.constant 96 : index
    %47 = vector.load %arg12[%c0_72, %c96_73] : memref<8x256xf32, #tpu.memory_space<vmem>>, vector<8x16xf32>
    tpu.vector_store %arg12[%c0_72, %c96_73], %46 {strides = array<i32>} : memref<8x256xf32, #tpu.memory_space<vmem>>, vector<8x16xf32>,
    %c0_74 = arith.constant 0 : index
    %c7 = arith.constant 7 : index
    %c0_75 = arith.constant 0 : index
    %48 = vector.load %arg10[%c0_74, %c7, %c0_75] : memref<8x16x16xf32, #tpu.memory_space<vmem>>, vector<8x1x16xf32>
    %49 = vector.shape_cast %48 : vector<8x1x16xf32> to vector<8x16xf32>
    %c0_76 = arith.constant 0 : index
    %c112 = arith.constant 112 : index
    %50 = vector.load %arg11[%c0_76, %c112] : memref<8x256xf32, #tpu.memory_space<vmem>>, vector<8x16xf32>
    tpu.vector_store %arg11[%c0_76, %c112], %49 {strides = array<i32>} : memref<8x256xf32, #tpu.memory_space<vmem>>, vector<8x16xf32>,
    %c0_77 = arith.constant 0 : index
    %c0_78 = arith.constant 0 : index
    %c7_79 = arith.constant 7 : index
    %c0_80 = arith.constant 0 : index
    %51 = vector.load %arg1[%c0_77, %c0_78, %c7_79, %c0_80] : memref<1x8x16x16xf32, #tpu.memory_space<vmem>>, vector<1x8x1x16xf32>
    %52 = vector.shape_cast %51 : vector<1x8x1x16xf32> to vector<8x16xf32>
    %c0_81 = arith.constant 0 : index
    %c112_82 = arith.constant 112 : index
    %53 = vector.load %arg12[%c0_81, %c112_82] : memref<8x256xf32, #tpu.memory_space<vmem>>, vector<8x16xf32>
    tpu.vector_store %arg12[%c0_81, %c112_82], %52 {strides = array<i32>} : memref<8x256xf32, #tpu.memory_space<vmem>>, vector<8x16xf32>,
    %c0_83 = arith.constant 0 : index
    %c8 = arith.constant 8 : index
    %c0_84 = arith.constant 0 : index
    %54 = vector.load %arg10[%c0_83, %c8, %c0_84] : memref<8x16x16xf32, #tpu.memory_space<vmem>>, vector<8x1x16xf32>
    %55 = vector.shape_cast %54 : vector<8x1x16xf32> to vector<8x16xf32>
    %c0_85 = arith.constant 0 : index
    %c128 = arith.constant 128 : index
    %56 = vector.load %arg11[%c0_85, %c128] : memref<8x256xf32, #tpu.memory_space<vmem>>, vector<8x16xf32>
    tpu.vector_store %arg11[%c0_85, %c128], %55 {strides = array<i32>} : memref<8x256xf32, #tpu.memory_space<vmem>>, vector<8x16xf32>,
    %c0_86 = arith.constant 0 : index
    %c0_87 = arith.constant 0 : index
    %c8_88 = arith.constant 8 : index
    %c0_89 = arith.constant 0 : index
    %57 = vector.load %arg1[%c0_86, %c0_87, %c8_88, %c0_89] : memref<1x8x16x16xf32, #tpu.memory_space<vmem>>, vector<1x8x1x16xf32>
    %58 = vector.shape_cast %57 : vector<1x8x1x16xf32> to vector<8x16xf32>
    %c0_90 = arith.constant 0 : index
    %c128_91 = arith.constant 128 : index
    %59 = vector.load %arg12[%c0_90, %c128_91] : memref<8x256xf32, #tpu.memory_space<vmem>>, vector<8x16xf32>
    tpu.vector_store %arg12[%c0_90, %c128_91], %58 {strides = array<i32>} : memref<8x256xf32, #tpu.memory_space<vmem>>, vector<8x16xf32>,
    %c0_92 = arith.constant 0 : index
    %c9 = arith.constant 9 : index
    %c0_93 = arith.constant 0 : index
    %60 = vector.load %arg10[%c0_92, %c9, %c0_93] : memref<8x16x16xf32, #tpu.memory_space<vmem>>, vector<8x1x16xf32>
    %61 = vector.shape_cast %60 : vector<8x1x16xf32> to vector<8x16xf32>
    %c0_94 = arith.constant 0 : index
    %c144 = arith.constant 144 : index
    %62 = vector.load %arg11[%c0_94, %c144] : memref<8x256xf32, #tpu.memory_space<vmem>>, vector<8x16xf32>
    tpu.vector_store %arg11[%c0_94, %c144], %61 {strides = array<i32>} : memref<8x256xf32, #tpu.memory_space<vmem>>, vector<8x16xf32>,
    %c0_95 = arith.constant 0 : index
    %c0_96 = arith.constant 0 : index
    %c9_97 = arith.constant 9 : index
    %c0_98 = arith.constant 0 : index
    %63 = vector.load %arg1[%c0_95, %c0_96, %c9_97, %c0_98] : memref<1x8x16x16xf32, #tpu.memory_space<vmem>>, vector<1x8x1x16xf32>
    %64 = vector.shape_cast %63 : vector<1x8x1x16xf32> to vector<8x16xf32>
    %c0_99 = arith.constant 0 : index
    %c144_100 = arith.constant 144 : index
    %65 = vector.load %arg12[%c0_99, %c144_100] : memref<8x256xf32, #tpu.memory_space<vmem>>, vector<8x16xf32>
    tpu.vector_store %arg12[%c0_99, %c144_100], %64 {strides = array<i32>} : memref<8x256xf32, #tpu.memory_space<vmem>>, vector<8x16xf32>,
    %c0_101 = arith.constant 0 : index
    %c10 = arith.constant 10 : index
    %c0_102 = arith.constant 0 : index
    %66 = vector.load %arg10[%c0_101, %c10, %c0_102] : memref<8x16x16xf32, #tpu.memory_space<vmem>>, vector<8x1x16xf32>
    %67 = vector.shape_cast %66 : vector<8x1x16xf32> to vector<8x16xf32>
    %c0_103 = arith.constant 0 : index
    %c160 = arith.constant 160 : index
    %68 = vector.load %arg11[%c0_103, %c160] : memref<8x256xf32, #tpu.memory_space<vmem>>, vector<8x16xf32>
    tpu.vector_store %arg11[%c0_103, %c160], %67 {strides = array<i32>} : memref<8x256xf32, #tpu.memory_space<vmem>>, vector<8x16xf32>,
    %c0_104 = arith.constant 0 : index
    %c0_105 = arith.constant 0 : index
    %c10_106 = arith.constant 10 : index
    %c0_107 = arith.constant 0 : index
    %69 = vector.load %arg1[%c0_104, %c0_105, %c10_106, %c0_107] : memref<1x8x16x16xf32, #tpu.memory_space<vmem>>, vector<1x8x1x16xf32>
    %70 = vector.shape_cast %69 : vector<1x8x1x16xf32> to vector<8x16xf32>
    %c0_108 = arith.constant 0 : index
    %c160_109 = arith.constant 160 : index
    %71 = vector.load %arg12[%c0_108, %c160_109] : memref<8x256xf32, #tpu.memory_space<vmem>>, vector<8x16xf32>
    tpu.vector_store %arg12[%c0_108, %c160_109], %70 {strides = array<i32>} : memref<8x256xf32, #tpu.memory_space<vmem>>, vector<8x16xf32>,
    %c0_110 = arith.constant 0 : index
    %c11 = arith.constant 11 : index
    %c0_111 = arith.constant 0 : index
    %72 = vector.load %arg10[%c0_110, %c11, %c0_111] : memref<8x16x16xf32, #tpu.memory_space<vmem>>, vector<8x1x16xf32>
    %73 = vector.shape_cast %72 : vector<8x1x16xf32> to vector<8x16xf32>
    %c0_112 = arith.constant 0 : index
    %c176 = arith.constant 176 : index
    %74 = vector.load %arg11[%c0_112, %c176] : memref<8x256xf32, #tpu.memory_space<vmem>>, vector<8x16xf32>
    tpu.vector_store %arg11[%c0_112, %c176], %73 {strides = array<i32>} : memref<8x256xf32, #tpu.memory_space<vmem>>, vector<8x16xf32>,
    %c0_113 = arith.constant 0 : index
    %c0_114 = arith.constant 0 : index
    %c11_115 = arith.constant 11 : index
    %c0_116 = arith.constant 0 : index
    %75 = vector.load %arg1[%c0_113, %c0_114, %c11_115, %c0_116] : memref<1x8x16x16xf32, #tpu.memory_space<vmem>>, vector<1x8x1x16xf32>
    %76 = vector.shape_cast %75 : vector<1x8x1x16xf32> to vector<8x16xf32>
    %c0_117 = arith.constant 0 : index
    %c176_118 = arith.constant 176 : index
    %77 = vector.load %arg12[%c0_117, %c176_118] : memref<8x256xf32, #tpu.memory_space<vmem>>, vector<8x16xf32>
    tpu.vector_store %arg12[%c0_117, %c176_118], %76 {strides = array<i32>} : memref<8x256xf32, #tpu.memory_space<vmem>>, vector<8x16xf32>,
    %c0_119 = arith.constant 0 : index
    %c12 = arith.constant 12 : index
    %c0_120 = arith.constant 0 : index
    %78 = vector.load %arg10[%c0_119, %c12, %c0_120] : memref<8x16x16xf32, #tpu.memory_space<vmem>>, vector<8x1x16xf32>
    %79 = vector.shape_cast %78 : vector<8x1x16xf32> to vector<8x16xf32>
    %c0_121 = arith.constant 0 : index
    %c192 = arith.constant 192 : index
    %80 = vector.load %arg11[%c0_121, %c192] : memref<8x256xf32, #tpu.memory_space<vmem>>, vector<8x16xf32>
    tpu.vector_store %arg11[%c0_121, %c192], %79 {strides = array<i32>} : memref<8x256xf32, #tpu.memory_space<vmem>>, vector<8x16xf32>,
    %c0_122 = arith.constant 0 : index
    %c0_123 = arith.constant 0 : index
    %c12_124 = arith.constant 12 : index
    %c0_125 = arith.constant 0 : index
    %81 = vector.load %arg1[%c0_122, %c0_123, %c12_124, %c0_125] : memref<1x8x16x16xf32, #tpu.memory_space<vmem>>, vector<1x8x1x16xf32>
    %82 = vector.shape_cast %81 : vector<1x8x1x16xf32> to vector<8x16xf32>
    %c0_126 = arith.constant 0 : index
    %c192_127 = arith.constant 192 : index
    %83 = vector.load %arg12[%c0_126, %c192_127] : memref<8x256xf32, #tpu.memory_space<vmem>>, vector<8x16xf32>
    tpu.vector_store %arg12[%c0_126, %c192_127], %82 {strides = array<i32>} : memref<8x256xf32, #tpu.memory_space<vmem>>, vector<8x16xf32>,
    %c0_128 = arith.constant 0 : index
    %c13 = arith.constant 13 : index
    %c0_129 = arith.constant 0 : index
    %84 = vector.load %arg10[%c0_128, %c13, %c0_129] : memref<8x16x16xf32, #tpu.memory_space<vmem>>, vector<8x1x16xf32>
    %85 = vector.shape_cast %84 : vector<8x1x16xf32> to vector<8x16xf32>
    %c0_130 = arith.constant 0 : index
    %c208 = arith.constant 208 : index
    %86 = vector.load %arg11[%c0_130, %c208] : memref<8x256xf32, #tpu.memory_space<vmem>>, vector<8x16xf32>
    tpu.vector_store %arg11[%c0_130, %c208], %85 {strides = array<i32>} : memref<8x256xf32, #tpu.memory_space<vmem>>, vector<8x16xf32>,
    %c0_131 = arith.constant 0 : index
    %c0_132 = arith.constant 0 : index
    %c13_133 = arith.constant 13 : index
    %c0_134 = arith.constant 0 : index
    %87 = vector.load %arg1[%c0_131, %c0_132, %c13_133, %c0_134] : memref<1x8x16x16xf32, #tpu.memory_space<vmem>>, vector<1x8x1x16xf32>
    %88 = vector.shape_cast %87 : vector<1x8x1x16xf32> to vector<8x16xf32>
    %c0_135 = arith.constant 0 : index
    %c208_136 = arith.constant 208 : index
    %89 = vector.load %arg12[%c0_135, %c208_136] : memref<8x256xf32, #tpu.memory_space<vmem>>, vector<8x16xf32>
    tpu.vector_store %arg12[%c0_135, %c208_136], %88 {strides = array<i32>} : memref<8x256xf32, #tpu.memory_space<vmem>>, vector<8x16xf32>,
    %c0_137 = arith.constant 0 : index
    %c14 = arith.constant 14 : index
    %c0_138 = arith.constant 0 : index
    %90 = vector.load %arg10[%c0_137, %c14, %c0_138] : memref<8x16x16xf32, #tpu.memory_space<vmem>>, vector<8x1x16xf32>
    %91 = vector.shape_cast %90 : vector<8x1x16xf32> to vector<8x16xf32>
    %c0_139 = arith.constant 0 : index
    %c224 = arith.constant 224 : index
    %92 = vector.load %arg11[%c0_139, %c224] : memref<8x256xf32, #tpu.memory_space<vmem>>, vector<8x16xf32>
    tpu.vector_store %arg11[%c0_139, %c224], %91 {strides = array<i32>} : memref<8x256xf32, #tpu.memory_space<vmem>>, vector<8x16xf32>,
    %c0_140 = arith.constant 0 : index
    %c0_141 = arith.constant 0 : index
    %c14_142 = arith.constant 14 : index
    %c0_143 = arith.constant 0 : index
    %93 = vector.load %arg1[%c0_140, %c0_141, %c14_142, %c0_143] : memref<1x8x16x16xf32, #tpu.memory_space<vmem>>, vector<1x8x1x16xf32>
    %94 = vector.shape_cast %93 : vector<1x8x1x16xf32> to vector<8x16xf32>
    %c0_144 = arith.constant 0 : index
    %c224_145 = arith.constant 224 : index
    %95 = vector.load %arg12[%c0_144, %c224_145] : memref<8x256xf32, #tpu.memory_space<vmem>>, vector<8x16xf32>
    tpu.vector_store %arg12[%c0_144, %c224_145], %94 {strides = array<i32>} : memref<8x256xf32, #tpu.memory_space<vmem>>, vector<8x16xf32>,
    %c0_146 = arith.constant 0 : index
    %c15 = arith.constant 15 : index
    %c0_147 = arith.constant 0 : index
    %96 = vector.load %arg10[%c0_146, %c15, %c0_147] : memref<8x16x16xf32, #tpu.memory_space<vmem>>, vector<8x1x16xf32>
    %97 = vector.shape_cast %96 : vector<8x1x16xf32> to vector<8x16xf32>
    %c0_148 = arith.constant 0 : index
    %c240 = arith.constant 240 : index
    %98 = vector.load %arg11[%c0_148, %c240] : memref<8x256xf32, #tpu.memory_space<vmem>>, vector<8x16xf32>
    tpu.vector_store %arg11[%c0_148, %c240], %97 {strides = array<i32>} : memref<8x256xf32, #tpu.memory_space<vmem>>, vector<8x16xf32>,
    %c0_149 = arith.constant 0 : index
    %c0_150 = arith.constant 0 : index
    %c15_151 = arith.constant 15 : index
    %c0_152 = arith.constant 0 : index
    %99 = vector.load %arg1[%c0_149, %c0_150, %c15_151, %c0_152] : memref<1x8x16x16xf32, #tpu.memory_space<vmem>>, vector<1x8x1x16xf32>
    %100 = vector.shape_cast %99 : vector<1x8x1x16xf32> to vector<8x16xf32>
    %c0_153 = arith.constant 0 : index
    %c240_154 = arith.constant 240 : index
    %101 = vector.load %arg12[%c0_153, %c240_154] : memref<8x256xf32, #tpu.memory_space<vmem>>, vector<8x16xf32>
    tpu.vector_store %arg12[%c0_153, %c240_154], %100 {strides = array<i32>} : memref<8x256xf32, #tpu.memory_space<vmem>>, vector<8x16xf32>,
    %c0_155 = arith.constant 0 : index
    %c0_156 = arith.constant 0 : index
    %102 = vector.load %arg3[%c0_155, %c0_156] : memref<8x8xbf16, #tpu.memory_space<vmem>>, vector<8x8xbf16>
    %c0_157 = arith.constant 0 : index
    %c0_158 = arith.constant 0 : index
    %103 = vector.load %arg11[%c0_157, %c0_158] : memref<8x256xf32, #tpu.memory_space<vmem>>, vector<8x256xf32>
    %104 = arith.truncf %103 : vector<8x256xf32> to vector<8x256xbf16>
    %cst_159 = arith.constant dense<0.000000e+00> : vector<8x256xf32>
    %105 = tpu.matmul %102, %104, %cst_159 {dimension_numbers = #tpu.dot_dimension_numbers<[1], [0], [0], [1], [0, 0, 1, 1], [], []>} : vector<8x8xbf16>, vector<8x256xbf16>, vector<8x256xf32> -> vector<8x256xf32>
    %c0_160 = arith.constant 0 : index
    %c0_161 = arith.constant 0 : index
    %106 = vector.load %arg4[%c0_160, %c0_161] : memref<8x1xf32, #tpu.memory_space<vmem>>, vector<8x1xf32>
    %107 = vector.broadcast %106 : vector<8x1xf32> to vector<8x256xf32>
    %108 = arith.addf %105, %107 : vector<8x256xf32>
    %cst_162 = arith.constant 0.000000e+00 : f32
    %109 = vector.broadcast %cst_162 : f32 to vector<8x256xf32>
    %110 = arith.maximumf %108, %109 : vector<8x256xf32>
    %111 = tpu.iota {dimensions = array<i32: 1>} : vector<8x256xi32>
    %cst_163 = arith.constant 0.000000e+00 : f32
    %112 = vector.broadcast %cst_163 : f32 to vector<8x256xf32>
    %c16_i32 = arith.constant 16 : i32
    %113 = tpu.dynamic_rotate %110 by %c16_i32 dim 1 : vector<8x256xf32>, i32 -> vector<8x256xf32>
    %c16_i32_164 = arith.constant 16 : i32
    %114 = vector.broadcast %c16_i32_164 : i32 to vector<8x256xi32>
    %115 = arith.cmpi sge, %111, %114 : vector<8x256xi32>
    %cst_165 = arith.constant 0.000000e+00 : f32
    %116 = vector.broadcast %cst_165 : f32 to vector<8x256xf32>
    %117 = arith.select %115, %113, %116 : vector<8x256xi1>, vector<8x256xf32>
    %c0_166 = arith.constant 0 : index
    %c0_167 = arith.constant 0 : index
    %c0_168 = arith.constant 0 : index
    %118 = vector.load %arg5[%c0_166, %c0_167, %c0_168] : memref<3x8x1xf32, #tpu.memory_space<vmem>>, vector<1x8x1xf32>
    %119 = vector.shape_cast %118 : vector<1x8x1xf32> to vector<8x1xf32>
    %120 = vector.broadcast %119 : vector<8x1xf32> to vector<8x256xf32>
    %121 = arith.mulf %120, %117 : vector<8x256xf32>
    %122 = arith.addf %112, %121 : vector<8x256xf32>
    %c1_169 = arith.constant 1 : index
    %c0_170 = arith.constant 0 : index
    %c0_171 = arith.constant 0 : index
    %123 = vector.load %arg5[%c1_169, %c0_170, %c0_171] : memref<3x8x1xf32, #tpu.memory_space<vmem>>, vector<1x8x1xf32>
    %124 = vector.shape_cast %123 : vector<1x8x1xf32> to vector<8x1xf32>
    %125 = vector.broadcast %124 : vector<8x1xf32> to vector<8x256xf32>
    %126 = arith.mulf %125, %110 : vector<8x256xf32>
    %127 = arith.addf %122, %126 : vector<8x256xf32>
    %c240_i32 = arith.constant 240 : i32
    %128 = tpu.dynamic_rotate %110 by %c240_i32 dim 1 : vector<8x256xf32>, i32 -> vector<8x256xf32>
    %c240_i32_172 = arith.constant 240 : i32
    %129 = vector.broadcast %c240_i32_172 : i32 to vector<8x256xi32>
    %130 = arith.cmpi slt, %111, %129 : vector<8x256xi32>
    %cst_173 = arith.constant 0.000000e+00 : f32
    %131 = vector.broadcast %cst_173 : f32 to vector<8x256xf32>
    %132 = arith.select %130, %128, %131 : vector<8x256xi1>, vector<8x256xf32>
    %c2_174 = arith.constant 2 : index
    %c0_175 = arith.constant 0 : index
    %c0_176 = arith.constant 0 : index
    %133 = vector.load %arg5[%c2_174, %c0_175, %c0_176] : memref<3x8x1xf32, #tpu.memory_space<vmem>>, vector<1x8x1xf32>
    %134 = vector.shape_cast %133 : vector<1x8x1xf32> to vector<8x1xf32>
    %135 = vector.broadcast %134 : vector<8x1xf32> to vector<8x256xf32>
    %136 = arith.mulf %135, %132 : vector<8x256xf32>
    %137 = arith.addf %127, %136 : vector<8x256xf32>
    %c0_177 = arith.constant 0 : index
    %c0_178 = arith.constant 0 : index
    %138 = vector.load %arg6[%c0_177, %c0_178] : memref<8x1xf32, #tpu.memory_space<vmem>>, vector<8x1xf32>
    %139 = vector.broadcast %138 : vector<8x1xf32> to vector<8x256xf32>
    %140 = arith.addf %137, %139 : vector<8x256xf32>
    %cst_179 = arith.constant 0.000000e+00 : f32
    %141 = vector.broadcast %cst_179 : f32 to vector<8x256xf32>
    %142 = arith.maximumf %140, %141 : vector<8x256xf32>
    %c0_180 = arith.constant 0 : index
    %c0_181 = arith.constant 0 : index
    %143 = vector.load %arg7[%c0_180, %c0_181] : memref<8x8xbf16, #tpu.memory_space<vmem>>, vector<8x8xbf16>
    %144 = arith.truncf %142 : vector<8x256xf32> to vector<8x256xbf16>
    %cst_182 = arith.constant dense<0.000000e+00> : vector<8x256xf32>
    %145 = tpu.matmul %143, %144, %cst_182 {dimension_numbers = #tpu.dot_dimension_numbers<[1], [0], [0], [1], [0, 0, 1, 1], [], []>} : vector<8x8xbf16>, vector<8x256xbf16>, vector<8x256xf32> -> vector<8x256xf32>
    %c0_183 = arith.constant 0 : index
    %c0_184 = arith.constant 0 : index
    %146 = vector.load %arg8[%c0_183, %c0_184] : memref<8x1xf32, #tpu.memory_space<vmem>>, vector<8x1xf32>
    %147 = vector.broadcast %146 : vector<8x1xf32> to vector<8x256xf32>
    %148 = arith.addf %145, %147 : vector<8x256xf32>
    %c0_185 = arith.constant 0 : index
    %c0_186 = arith.constant 0 : index
    %149 = vector.load %arg12[%c0_185, %c0_186] : memref<8x256xf32, #tpu.memory_space<vmem>>, vector<8x256xf32>
    %150 = arith.addf %148, %149 : vector<8x256xf32>
    %cst_187 = arith.constant 0.000000e+00 : f32
    %151 = vector.broadcast %cst_187 : f32 to vector<8x256xf32>
    %152 = arith.maximumf %150, %151 : vector<8x256xf32>
    %c0_188 = arith.constant 0 : index
    %c0_189 = arith.constant 0 : index
    %c0_190 = arith.constant 0 : index
    %153 = vector.load %arg9[%c0_188, %c0_189, %c0_190] : memref<1x8x256xf32, #tpu.memory_space<vmem>>, vector<1x8x256xf32>
    %154 = vector.shape_cast %153 : vector<1x8x256xf32> to vector<8x256xf32>
    %155 = vector.shape_cast %152 : vector<8x256xf32> to vector<1x8x256xf32>
    tpu.vector_store %arg9[%c0_188, %c0_189, %c0_190], %155 {strides = array<i32>} : memref<1x8x256xf32, #tpu.memory_space<vmem>>, vector<1x8x256xf32>,
    return
  }
  func.func @transform_0(%arg0: i32) -> (i32, i32, i32, i32) {
    %c0_i32 = arith.constant 0 : i32
    %c0_i32_0 = arith.constant 0 : i32
    %c0_i32_1 = arith.constant 0 : i32
    %c0_i32_2 = arith.constant 0 : i32
    return %arg0, %c0_i32, %c0_i32_0, %c0_i32_1 : i32, i32, i32, i32
  }
  func.func @transform_1(%arg0: i32) -> (i32, i32, i32) {
    %c0_i32 = arith.constant 0 : i32
    %c0_i32_0 = arith.constant 0 : i32
    %c0_i32_1 = arith.constant 0 : i32
    %c0_i32_2 = arith.constant 0 : i32
    return %c0_i32, %c0_i32_0, %c0_i32_1 : i32, i32, i32
  }
  func.func @transform_2(%arg0: i32) -> (i32, i32) {
    %c0_i32 = arith.constant 0 : i32
    %c0_i32_0 = arith.constant 0 : i32
    %c0_i32_1 = arith.constant 0 : i32
    return %c0_i32, %c0_i32_0 : i32, i32
  }
  func.func @transform_3(%arg0: i32) -> (i32, i32) {
    %c0_i32 = arith.constant 0 : i32
    %c0_i32_0 = arith.constant 0 : i32
    %c0_i32_1 = arith.constant 0 : i32
    return %c0_i32, %c0_i32_0 : i32, i32
  }
  func.func @transform_4(%arg0: i32) -> (i32, i32, i32) {
    %c0_i32 = arith.constant 0 : i32
    %c0_i32_0 = arith.constant 0 : i32
    %c0_i32_1 = arith.constant 0 : i32
    %c0_i32_2 = arith.constant 0 : i32
    return %c0_i32, %c0_i32_0, %c0_i32_1 : i32, i32, i32
  }
  func.func @transform_5(%arg0: i32) -> (i32, i32) {
    %c0_i32 = arith.constant 0 : i32
    %c0_i32_0 = arith.constant 0 : i32
    %c0_i32_1 = arith.constant 0 : i32
    return %c0_i32, %c0_i32_0 : i32, i32
  }
  func.func @transform_6(%arg0: i32) -> (i32, i32) {
    %c0_i32 = arith.constant 0 : i32
    %c0_i32_0 = arith.constant 0 : i32
    %c0_i32_1 = arith.constant 0 : i32
    return %c0_i32, %c0_i32_0 : i32, i32
  }
  func.func @transform_7(%arg0: i32) -> (i32, i32) {
    %c0_i32 = arith.constant 0 : i32
    %c0_i32_0 = arith.constant 0 : i32
    %c0_i32_1 = arith.constant 0 : i32
    return %c0_i32, %c0_i32_0 : i32, i32
  }
  func.func @transform_8(%arg0: i32) -> (i32, i32, i32) {
    %c0_i32 = arith.constant 0 : i32
    %c0_i32_0 = arith.constant 0 : i32
    %c0_i32_1 = arith.constant 0 : i32
    return %arg0, %c0_i32, %c0_i32_0 : i32, i32, i32
  }
}

</mosaic_0001>

<bundles_post_ra>
// kernel: tpu_custom_call.1
= control target key start
LH: loop header
LB: loop body
LE: loop exit
PB: predicated region body
PF: predicated region fallthrough
CT: control target
= control target key end

     0   :  { %13 = vsyncpa [#allocation6], 0  ;;  %s3303_s0 = inlined_call_operand.hbm [shape: f32[2,8,16,16], index: 0, kind: input, shape index: {}]   ;;  %s3304_s1 = inlined_call_operand.hbm [shape: bf16[8,16,16], index: 1, kind: input, shape index: {}]   ;;  %s3305_s2 = inlined_call_operand.vmem [shape: bf16[8,8], index: 2, kind: input, shape index: {}]   ;;  %s3306_s3 = inlined_call_operand.vmem [shape: f32[8,1], index: 3, kind: input, shape index: {}]   ;;  %s3307_s4 = inlined_call_operand.vmem [shape: f32[3,8,1], index: 4, kind: input, shape index: {}]   ;;  %s3308_s5 = inlined_call_operand.vmem [shape: f32[8,1], index: 5, kind: input, shape index: {}]   ;;  %s3309_s6 = inlined_call_operand.vmem [shape: bf16[8,8], index: 6, kind: input, shape index: {}]   ;;  %s3310_s7 = inlined_call_operand.vmem [shape: f32[8,1], index: 7, kind: input, shape index: {}]   ;;  %s3311_s8 = inlined_call_operand.hbm [shape: f32[2,8,256], index: 8, kind: output, shape index: {}]  }
   0x1   :  { %15 = vsyncpa [#allocation6 + $0x1], 0 }
   0x2   :  { %16 = vsyncpa [#allocation9], 0 }
   0x3   :  { %17 = vsyncpa [#allocation7], 0 }
   0x4   :  { %19 = vsyncpa [#allocation7 + $0x1], 0  ;;  %s2562_s27 = smov 0   ;;  %s2564_s28 = smov 0  }
   0x5   :  { %s2566_s29 = smov 0   ;;  %s2568_s30 = smov 0  }
   0x6 LB: > { %s2583_s9 = sadd.s32 4294967295, %s2498_s30   ;;  %s2185_s10 = sadd.s32 4294967294, %s2498_s30   ;;  %s2498_s30 = sphi %s2568_s30, %s3337_s30   ;;  %s2494_s29 = sphi %s2566_s29, %s3340_s29   ;;  %s2490_s28 = sphi %s2564_s28, %s3339_s28   ;;  %s2486_s27 = sphi %s2562_s27, %s3338_s27  }
   0x7   : > { %p45_p0 = scmp.ne.s32.totalorder %s2490_s28, %s2486_s27  ;;  %p3312_p1 = scmp.eq.s32.totalorder %s2583_s9, 0 }
   0x8   : > { %p222_p3 = scmp.eq.s32.totalorder %s2185_s10, 1  ;;  %p2186_p5 = scmp.ge.s32.totalorder %s2498_s30, 1 }
   0x9   : > { %p2592_p4 = por %p3312_p1, %p45_p0  ;;  %p229_p7 = scmp.lt.s32.totalorder %s2498_s30, 3 }
   0xa   : > { %p2597_p6 = por %p222_p3, %p45_p0  ;;  %s2500_s14 = smov [#allocation8]  }
   0xb   : > { %s3320_s11 = scalar_select %p2592_p4, 1, 0 }
   0xc   : > { %s3321_s12 = scalar_select %p2597_p6, 1, 0 }
   0xd   : > { %p2602_p8 = pnand %p2186_p5, %p229_p7  ;;  %s241_s15 = sshll.u32 %s2500_s14, 4  ;;  %s2606_s15 = int_to_ptr.vmem [resolvable:$true] %s241_s15 }
   0xe   : > { %s2618_s17 = sadd.s32 1, %s2498_s30   ;;  %s32_s18 = sadd.s32 1, %s2494_s29 }
   0xf   : > { %s3322_s13 = scalar_select %p2602_p8, 1, 0 }
  0x10   : > { %p2297_p9 = pneg %p2602_p8  ;;  %3324 = sst [smem:[#allocation14_spill]] %s2618_s17 }
  0x11   : > { %s29_s19 = ssub.s32 %s2498_s30, %s2618_s17  ;;  %s2370_s22 = scalar_lea.hbm %s3304_s1, 1024 }
  0x12   : > { %p2613_p11 = pnand %p2297_p9, %p3312_p1  ;;  %p2371_p12 = scmp.ne.s32.totalorder %s3304_s1, %s2370_s22 }
  0x13   : > { %p2377_p5 = scmp.lt.u32.totalorder %s2370_s22, %s3304_s1 }
  0x14   : > { %p2372_p13 = pneg %p2613_p11 }
  0x16   : > { %p2373_p0 = pnand %p2372_p13, %p2371_p12 }
  0x18   : > { %p2374_p3 = pneg %p2373_p0 }
  0x1a   : > { %p2379_p7 = pnand %p2377_p5, %p2374_p3 }
  0x1c   : > { %2382 = shalt.err (!%p2379_p7)
}
  0x1d   : > { %s2383_s10 = scalar_lea.vmem %s2606_s15, 1024  ;;  %p2391_p2 = scmp.lt.s32.totalorder %s2606_s15, %s2606_s15 }
  0x1e   : > { %p2384_p9 = scmp.ne.s32.totalorder %s2606_s15, %s2383_s10  ;;  %p2392_p6 = scmp.lt.s32.totalorder %s2383_s10, %s2383_s10 }
  0x20   : > { %p2386_p10 = pnand %p2384_p9, %p2372_p13  ;;  %p2393_p4 = por %p2392_p6, %p2391_p2 }
  0x22   : > { %p2387_p1 = pneg %p2386_p10 }
  0x24   : > { %p2394_p8 = pnand %p2393_p4, %p2387_p1 }
  0x26   : > { %2397 = shalt.err (!%p2394_p8)
}
  0x27   : > { %s2501_s14 = smov 64   ;;  %s2502_s20 = smov 4  }
  0x28   : > { %2300 = dma.hbm_to_vmem [thread:$0]  (!%p2613_p11), %s3304_s1, 1024, %s2606_s15, [#allocation9], %s2501_s14, %s2501_s14, %s2502_s20  }
  0x29   : > { %p30_p2 = scmp.eq.s32.totalorder %s29_s19, 0  ;;  %p39_p1 = scmp.ne.s32.totalorder %s2494_s29, %s2490_s28 }
  0x2a   : > { %p40_p4 = scmp.eq.s32.totalorder %s2498_s30, 0  ;;  %p2310_p6 = scmp.lt.s32.totalorder %s2498_s30, 2 }
  0x2b   : > { %s2649_s23 = scalar_select %p30_p2, %s2494_s29, %s32_s18  }
  0x2c   : > { %p41_p8 = por %p40_p4, %p39_p1  ;;  %p3325_p10 = scmp.eq.s32.totalorder %s2583_s9, 1 }
  0x2d   : > { %s273_s25 = sand.u32 1, %s2494_s29   ;;  %s2223_s26 = sshll.u32 %s2498_s30, 11 }
  0x2e   : > { %p2653_p12 = por %p3325_p10, %p39_p1  ;;  %s2189_s10 = sshll.u32 %s273_s25, 7 }
  0x2f   : > { %s2662_s21 = scalar_lea.hbm %s3303_s0, %s2223_s26  ;;  %s277_s15 = scalar_lea.vmem [#allocation5], %s2189_s10 }
  0x30   : > { %s284_s18 = sshll.u32 %s277_s15, 4  ;;  %p2664_p11 = pnand %p2310_p6, %p41_p8  ;;  %s2668_s18 = int_to_ptr.vmem [resolvable:$true] %s284_s18 }
  0x31   : > { %s2670_s14 = scalar_lea.sflag [#allocation6], %s273_s25  ;;  %s2398_s20 = scalar_lea.hbm %s2662_s21, 2048 }
  0x32   : > { %p2399_p13 = scmp.ne.s32.totalorder %s2662_s21, %s2398_s20  ;;  %p2400_p0 = pneg %p2664_p11 }
  0x33   : > { %s2403_s26 = scalar_lea.hbm %s3303_s0, 4096  ;;  %p2404_p7 = scmp.lt.u32.totalorder %s2662_s21, %s3303_s0 }
  0x34   : > { %p2401_p3 = pnand %p2400_p0, %p2399_p13  ;;  %p2405_p9 = scmp.lt.u32.totalorder %s2403_s26, %s2398_s20 }
  0x35   : > { %p2407_p1 = scmp.lt.u32.totalorder %s2398_s20, %s2662_s21 }
  0x36   : > { %p2402_p5 = pneg %p2401_p3  ;;  %p2406_p2 = por %p2405_p9, %p2404_p7 }
  0x38   : > { %p2408_p4 = por %p2407_p1, %p2406_p2 }
  0x3a   : > { %p2409_p6 = pnand %p2408_p4, %p2402_p5 }
  0x3c   : > { %2412 = shalt.err (!%p2409_p6)
}
  0x3d   : > { %s2413_s25 = scalar_lea.vmem %s2668_s18, 2048  ;;  %s2503_s15 = smov [#allocation5]  }
  0x3e   : > { %p2414_p8 = scmp.ne.s32.totalorder %s2668_s18, %s2413_s25  ;;  %s2418_s17 = sshll.u32 %s2503_s15, 4  ;;  %s2419_s17 = int_to_ptr.vmem [resolvable:$false] %s2418_s17 }
  0x3f   : > { %s2420_s22 = scalar_lea.vmem %s2419_s17, 4096  ;;  %p2421_p3 = scmp.lt.s32.totalorder %s2668_s18, %s2419_s17 }
  0x40   : > { %p2416_p10 = pnand %p2414_p8, %p2400_p0  ;;  %p2422_p7 = scmp.lt.s32.totalorder %s2420_s22, %s2413_s25 }
  0x42   : > { %p2417_p13 = pneg %p2416_p10  ;;  %p2423_p9 = por %p2422_p7, %p2421_p3 }
  0x44   : > { %p2424_p2 = pnand %p2423_p9, %p2417_p13 }
  0x46   : > { %2427 = shalt.err (!%p2424_p2)
}
  0x47   : > { %s2504_s20 = smov 128   ;;  %s2505_s26 = smov 8  }
  0x48   : > { %2304 = dma.hbm_to_vmem [thread:$0]  (!%p2664_p11), %s2662_s21, 2048, %s2668_s18, %s2670_s14, %s2504_s20, %s2504_s20, %s2505_s26  }
  0x49   : > { %p3328_p0 = scmp.ne.s32.totalorder %s3322_s13, 0 }
  0x4a   : > { %s2701_s10 = sand.u32 (!%p3328_p0), 1, %s2490_s28   ;;  %p3329_p5 = scmp.ne.s32.totalorder (!%p3328_p0), %s3320_s11, 0 }
  0x4b   : > { %296 = sbr.rel (%p3328_p0) target bundleno = 1093 (0x445), region = 52  ;;  %s2193_s16 = sshll.u32 (!%p3328_p0), %s2701_s10, 7 }
  0x4c   : > { %s299_s25 = scalar_lea.sflag (!%p3328_p0), [#allocation6], %s2701_s10  ;;  %s2705_s15 = scalar_lea.vmem (!%p3328_p0), [#allocation5], %s2193_s16 }
  0x52   : > { %2473 = dma.done.wait (%p3329_p5), %s299_s25, 2048  }
  0x53   : > { %2475 = vsyncadd (%p3329_p5), %s299_s25, 4294965248  ;;  %p3330_p11 = scmp.eq.s32.totalorder %s2583_s9, 0 }
  0x55   : > { %2477 = dma.done.wait (%p3330_p11), [#allocation9], 1024   ;;  %p3331_p1 = pmov %p3330_p11 }
  0x56   : > { %v2506_v0 = vmov 0.0   ;;  %vm2507_vm0 = vmmov 0   ;;  %v2362_v1 = vld [vmem:[#allocation8] sm:$0xff]   ;;  %v2363_v2 = vld [vmem:[#allocation8 + $0x8] sm:$0xff]   ;;  %vm386_vm1 = vcmask 130048   ;;  %v342_v5 = vld [vmem:[%s2705_s15 + $0x10] sm:$0xff] }
  0x57   : > { %2479 = vsyncadd (%p3331_p1), [#allocation9], 4294966272  ;;  %2241 = vmatprep.subr.bf16.mxu0 %v2506_v0  ;;  %2247 = vmatprep.subr.bf16.mxu1 %v2506_v0  ;;  %v340_v3 = vld [vmem:[%s2705_s15] sm:$0xff]  ;;  %v341_v4 = vld [vmem:[%s2705_s15 + $0x8] sm:$0xff]  ;;  %vm814_vm2 = vcmask 1041409   ;;  %vm817_vm3 = vcmask 1042434  }
  0x58   : > { %2243 = vmatprep.mubr.msk.bf16.mxu0 %vm2507_vm0, %v2506_v0  ;;  %2249 = vmatprep.mubr.msk.bf16.mxu1 %vm2507_vm0, %v2506_v0  ;;  %v356_v6 = vpack.c.bf16 %v341_v4, %v340_v3  ;;  %v343_v7 = vld [vmem:[%s2705_s15 + $0x18] sm:$0xff]  ;;  %v2364_v9 = vld [vmem:[#allocation8 + $0x10] sm:$0xff]   ;;  %v344_v11 = vld [vmem:[%s2705_s15 + $0x20] sm:$0xff]  ;;  %vm820_vm4 = vcmask 1043459   ;;  %vm823_vm5 = vcmask 1044484   ;;  %vm826_vm6 = vcmask 1045509  }
  0x59   : > { %2242 = vmatpush3.bf16.msra.mxu0 %v2362_v1  ;;  %2248 = vmatpush3.bf16.msra.mxu1 %v2363_v2  ;;  %v357_v8 = vpack.c.bf16 %v343_v7, %v342_v5  ;;  %v2365_v10 = vld [vmem:[#allocation8 + $0x18] sm:$0xff]   ;;  %v345_v12 = vld [vmem:[%s2705_s15 + $0x28] sm:$0xff]  ;;  %v346_v13 = vld [vmem:[%s2705_s15 + $0x30] sm:$0xff]  ;;  %vm829_vm7 = vcmask 1046534   ;;  %vm832_vm8 = vcmask 1047559   ;;  %s2508_s11 = smov 32  }
  0x5a   : > { %2253 = vmatprep.subr.bf16.mxu0 %v2506_v0  ;;  %2259 = vmatprep.subr.bf16.mxu1 %v2506_v0  ;;  %v347_v14 = vld [vmem:[%s2705_s15 + $0x38] sm:$0xff]  ;;  %v358_v15 = vpack.c.bf16 %v345_v12, %v344_v11  ;;  %v2366_v17 = vld [vmem:[#allocation8 + $0x20] sm:$0xff]   ;;  %v2367_v18 = vld [vmem:[#allocation8 + $0x28] sm:$0xff]   ;;  %s2509_s13 = smov 16   ;;  %s2510_s21 = smov 48   ;;  %vm901_vm9 = vcmask 261248  }
  0x5b   : > { %v359_v16 = vpack.c.bf16 %v347_v14, %v346_v13  ;;  %v348_v19 = vld [vmem:[%s2705_s15 + $0x40] sm:$0xff]  ;;  %v349_v20 = vld [vmem:[%s2705_s15 + $0x48] sm:$0xff]  ;;  %v350_v21 = vld [vmem:[%s2705_s15 + $0x50] sm:$0xff]  ;;  %s2511_s18 = smov 64   ;;  %s2512_s19 = smov 80   ;;  %vm970_vm10 = vcmask 392448  }
  0x5c   : > { %2244 = vmatmul.mubr.msk.bf16.vlgmr.msra.gmra.mrb[0].mxu0 %vm386_vm1, %v356_v6  ;;  %2250 = vmatmul.mubr.msk.bf16.vlgmr.msra.gmra.mrb[0].mxu1 %vm386_vm1, %v357_v8  ;;  %v351_v22 = vld [vmem:[%s2705_s15 + $0x58] sm:$0xff]  ;;  %v360_v23 = vpack.c.bf16 %v349_v20, %v348_v19  ;;  %v2368_v25 = vld [vmem:[#allocation8 + $0x30] sm:$0xff]   ;;  %v352_v27 = vld [vmem:[%s2705_s15 + $0x60] sm:$0xff]  ;;  %s3317_s14 = smov 96   ;;  %s2514_s17 = smov 112   ;;  %vm1039_vm11 = vcmask 523648  }
  0x5d   : > { %2254 = vmatpush3.bf16.msra.mxu0 %v2364_v9  ;;  %2260 = vmatpush3.bf16.msra.mxu1 %v2365_v10  ;;  %v361_v24 = vpack.c.bf16 %v351_v22, %v350_v21  ;;  %v2369_v26 = vld [vmem:[#allocation8 + $0x38] sm:$0xff]   ;;  %v353_v28 = vld [vmem:[%s2705_s15 + $0x68] sm:$0xff]  ;;  %v354_v29 = vld [vmem:[%s2705_s15 + $0x70] sm:$0xff]  ;;  %vm1108_vm12 = vcmask 654848   ;;  %vm1177_vm13 = vcmask 786048   ;;  %vm1246_vm14 = vcmask 917248  }
  0x5e   : > { %2255 = vmatprep.mubr.msk.bf16.mxu0 %vm2507_vm0, %v2506_v0  ;;  %2261 = vmatprep.mubr.msk.bf16.mxu1 %vm2507_vm0, %v2506_v0  ;;  %v355_v30 = vld [vmem:[%s2705_s15 + $0x78] sm:$0xff]  ;;  %v362_v31 = vpack.c.bf16 %v353_v28, %v352_v27  ;;  %vm3319_vm15 = vcmask 1048448   ;;  %s3332_s22 = smov 96   ;;  %s2091_s25 = scalar_lea.sflag [#allocation7], %s2701_s10 }
  0x5f   : > { %2265 = vmatprep.subr.bf16.mxu0 %v2506_v0  ;;  %2271 = vmatprep.subr.bf16.mxu1 %v2506_v0  ;;  %v363_v32 = vpack.c.bf16 %v355_v30, %v354_v29 }
  0x64   : > { %2256 = vmatmul.mubr.msk.bf16.vlgmr.msra.gmra.mrb[4].mxu0 %vm386_vm1, %v358_v15  ;;  %2262 = vmatmul.mubr.msk.bf16.vlgmr.msra.gmra.mrb[4].mxu1 %vm386_vm1, %v359_v16 }
  0x65   : > { %2266 = vmatpush3.bf16.msra.mxu0 %v2366_v17  ;;  %2272 = vmatpush3.bf16.msra.mxu1 %v2367_v18 }
  0x66   : > { %2267 = vmatprep.mubr.msk.bf16.mxu0 %vm2507_vm0, %v2506_v0  ;;  %2273 = vmatprep.mubr.msk.bf16.mxu1 %vm2507_vm0, %v2506_v0 }
  0x67   : > { %2277 = vmatprep.subr.bf16.mxu0 %v2506_v0  ;;  %2283 = vmatprep.subr.bf16.mxu1 %v2506_v0 }
  0x6c   : > { %2268 = vmatmul.mubr.msk.bf16.vlgmr.msra.gmra.mrb[8].mxu0 %vm386_vm1, %v360_v23  ;;  %2274 = vmatmul.mubr.msk.bf16.vlgmr.msra.gmra.mrb[8].mxu1 %vm386_vm1, %v361_v24 }
  0x6d   : > { %2278 = vmatpush3.bf16.msra.mxu0 %v2368_v25  ;;  %2284 = vmatpush3.bf16.msra.mxu1 %v2369_v26 }
  0x6e   : > { %2279 = vmatprep.mubr.msk.bf16.mxu0 %vm2507_vm0, %v2506_v0  ;;  %2285 = vmatprep.mubr.msk.bf16.mxu1 %vm2507_vm0, %v2506_v0  ;;  %vm1906_vm0 = vcmask 1043456  }
  0x74   : > { %2280 = vmatmul.mubr.msk.bf16.vlgmr.msra.gmra.mrb[12].mxu0 %vm386_vm1, %v362_v31  ;;  %2286 = vmatmul.mubr.msk.bf16.vlgmr.msra.gmra.mrb[12].mxu1 %vm386_vm1, %v363_v32 }
 0x12f   : > { %v424_v33 = vpop.f32.mrb[0].mxu0  ;;  %v474_v34 = vpop.f32.mrb[0].mxu1 }
 0x130   : > { %781 = vst.msk [vmem:[#allocation2] sm:$0xff] %vm386_vm1, %v424_v33  ;;  %v2245_v35 = vpop.f32.mrb[1].mxu0  ;;  %783 = vst.msk [vmem:[#allocation2 + $0x10] sm:$0xff] %vm386_vm1, %v474_v34  ;;  %v2251_v36 = vpop.f32.mrb[1].mxu1 }
 0x131   : > { %v427_v37 = vpop.f32.mrb[2].mxu0  ;;  %v477_v38 = vpop.f32.mrb[2].mxu1 }
 0x132   : > { %782 = vst.msk [vmem:[#allocation2 + $0x8] sm:$0xff] %vm386_vm1, %v427_v37  ;;  %v2246_v39 = vpop.f32.mrb[3].mxu0  ;;  %784 = vst.msk [vmem:[#allocation2 + $0x18] sm:$0xff] %vm386_vm1, %v477_v38  ;;  %v2252_v40 = vpop.f32.mrb[3].mxu1 }
 0x137   : > { %v524_v41 = vpop.f32.mrb[4].mxu0  ;;  %v574_v42 = vpop.f32.mrb[4].mxu1  ;;  %v938_v48 = vld [vmem:[#allocation2 + $0x12] sm:$0x1]  ;;  %v869_v50 = vld [vmem:[#allocation2 + $0x11] sm:$0x1] }
 0x138   : > { %785 = vst.msk [vmem:[#allocation2 + $0x20] sm:$0xff] %vm386_vm1, %v524_v41  ;;  %v2257_v43 = vpop.f32.mrb[5].mxu0  ;;  %787 = vst.msk [vmem:[#allocation2 + $0x30] sm:$0xff] %vm386_vm1, %v574_v42  ;;  %v2263_v44 = vpop.f32.mrb[5].mxu1  ;;  %v1007_v51 = vld [vmem:[#allocation2 + $0x13] sm:$0x1] }
 0x139   : > { %v527_v45 = vpop.f32.mrb[6].mxu0  ;;  %v577_v46 = vpop.f32.mrb[6].mxu1  ;;  %v1484_v52 = vld [vmem:[#allocation2 + $0x1a] sm:$0x1]  ;;  %v1076_v53 = vld [vmem:[#allocation2 + $0x14] sm:$0x1] }
 0x13a   : > { %786 = vst.msk [vmem:[#allocation2 + $0x28] sm:$0xff] %vm386_vm1, %v527_v45  ;;  %v2258_v47 = vpop.f32.mrb[7].mxu0  ;;  %788 = vst.msk [vmem:[#allocation2 + $0x38] sm:$0xff] %vm386_vm1, %v577_v46  ;;  %v2264_v49 = vpop.f32.mrb[7].mxu1  ;;  %v2755_v54 = vld [vmem:[#allocation2 + $0x1b] sm:$0x1] }
 0x13b   : > { %v953_v55 = vrot.slane %v938_v48, 7  ;;  %v884_v56 = vrot.slane %v869_v50, 7  ;;  %v1022_v57 = vrot.slane %v1007_v51, 7  ;;  %v2757_v58 = vld [vmem:[#allocation2 + $0x15] sm:$0x1]  ;;  %v1499_v62 = vrot.slane %v1484_v52, 7 }
 0x13c   : > { %v1091_v2 = vrot.slane %v1076_v53, 7  ;;  %v1567_v3 = vrot.slane %v2755_v54, 7  ;;  %v937_v6 = vld [vmem:[#allocation2 + $0x2] sm:$0x1]  ;;  %v868_v8 = vld [vmem:[#allocation2 + $0x1] sm:$0x1] }
 0x13d   : > { %v1160_v10 = vrot.slane %v2757_v58, 7  ;;  %v1006_v15 = vld [vmem:[#allocation2 + $0x3] sm:$0x1]  ;;  %v1483_v17 = vld [vmem:[#allocation2 + $0xa] sm:$0x1]  ;;  %v954_v23 = vsel %vm814_vm2, %v953_v55, %v937_v6  ;;  %v885_v24 = vsel %vm814_vm2, %v884_v56, %v868_v8 }
 0x13e   : > { %v1075_v22 = vld [vmem:[#allocation2 + $0x4] sm:$0x1]  ;;  %v1551_v29 = vld [vmem:[#allocation2 + $0xb] sm:$0x1]  ;;  %v1144_v30 = vld [vmem:[#allocation2 + $0x5] sm:$0x1]  ;;  %v1023_v31 = vsel %vm814_vm2, %v1022_v57, %v1006_v15  ;;  %v1500_v33 = vsel %vm814_vm2, %v1499_v62, %v1483_v17 }
 0x13f   : > { %v624_v59 = vpop.f32.mrb[8].mxu0  ;;  %v939_v60 = vld [vmem:[#allocation2 + $0x22] sm:$0x1]  ;;  %v870_v61 = vld [vmem:[#allocation2 + $0x21] sm:$0x1]  ;;  %v674_v63 = vpop.f32.mrb[8].mxu1  ;;  %v1092_v39 = vsel %vm814_vm2, %v1091_v2, %v1075_v22  ;;  %v1568_v48 = vsel %vm814_vm2, %v1567_v3, %v1551_v29  ;;  %v1161_v49 = vsel %vm814_vm2, %v1160_v10, %v1144_v30 }
 0x140   : > { %789 = vst.msk [vmem:[#allocation2 + $0x40] sm:$0xff] %vm386_vm1, %v624_v59  ;;  %v2269_v0 = vpop.f32.mrb[9].mxu0  ;;  %v2760_v1 = vld [vmem:[#allocation2 + $0x32] sm:$0x1]  ;;  %791 = vst.msk [vmem:[#allocation2 + $0x50] sm:$0xff] %vm386_vm1, %v674_v63  ;;  %v2275_v4 = vpop.f32.mrb[9].mxu1 }
 0x141   : > { %v627_v5 = vpop.f32.mrb[10].mxu0  ;;  %v955_v7 = vrot.slane %v939_v60, 6  ;;  %v2764_v9 = vld [vmem:[#allocation2 + $0x31] sm:$0x1]  ;;  %v677_v11 = vpop.f32.mrb[10].mxu1  ;;  %v957_v13 = vrot.slane %v2760_v1, 5 }
 0x142   : > { %790 = vst.msk [vmem:[#allocation2 + $0x48] sm:$0xff] %vm386_vm1, %v627_v5  ;;  %v2270_v12 = vpop.f32.mrb[11].mxu0  ;;  %v886_v14 = vrot.slane %v870_v61, 6  ;;  %v1008_v16 = vld [vmem:[#allocation2 + $0x23] sm:$0x1]  ;;  %792 = vst.msk [vmem:[#allocation2 + $0x58] sm:$0xff] %vm386_vm1, %v677_v11 }
 0x143   : > { %v2276_v18 = vpop.f32.mrb[11].mxu1  ;;  %v888_v19 = vrot.slane %v2764_v9, 5  ;;  %v1009_v20 = vld [vmem:[#allocation2 + $0x33] sm:$0x1]  ;;  %v1485_v21 = vld [vmem:[#allocation2 + $0x2a] sm:$0x1]  ;;  %v956_v37 = vsel %vm817_vm3, %v955_v7, %v954_v23 }
 0x144   : > { %v1024_v25 = vrot.slane %v1008_v16, 6  ;;  %v1486_v26 = vld [vmem:[#allocation2 + $0x3a] sm:$0x1]  ;;  %v1501_v27 = vrot.slane %v1485_v21, 6  ;;  %v1077_v28 = vld [vmem:[#allocation2 + $0x24] sm:$0x1]  ;;  %v887_v46 = vsel %vm817_vm3, %v886_v14, %v885_v24  ;;  %v958_v59 = vsel %vm820_vm4, %v957_v13, %v956_v37 }
 0x145   : > { %v1026_v32 = vrot.slane %v1009_v20, 5  ;;  %v1078_v34 = vld [vmem:[#allocation2 + $0x34] sm:$0x1]  ;;  %v1093_v35 = vrot.slane %v1077_v28, 6  ;;  %v1553_v36 = vld [vmem:[#allocation2 + $0x2b] sm:$0x1]  ;;  %v889_v2 = vsel %vm820_vm4, %v888_v19, %v887_v46 }
 0x146   : > { %v1503_v38 = vrot.slane %v1486_v26, 5  ;;  %v1554_v40 = vld [vmem:[#allocation2 + $0x3b] sm:$0x1]  ;;  %v1569_v41 = vrot.slane %v1553_v36, 6  ;;  %v2777_v42 = vld [vmem:[#allocation2 + $0x25] sm:$0x1]  ;;  %v1025_v55 = vsel %vm817_vm3, %v1024_v25, %v1023_v31  ;;  %v1502_v56 = vsel %vm817_vm3, %v1501_v27, %v1500_v33 }
 0x147   : > { %v724_v43 = vpop.f32.mrb[12].mxu0  ;;  %v941_v44 = vld [vmem:[#allocation2 + $0x42] sm:$0x1]  ;;  %v872_v45 = vld [vmem:[#allocation2 + $0x41] sm:$0x1]  ;;  %v1095_v47 = vrot.slane %v1078_v34, 5  ;;  %v1094_v62 = vsel %vm817_vm3, %v1093_v35, %v1092_v39  ;;  %v1027_v10 = vsel %vm820_vm4, %v1026_v32, %v1025_v55 }
 0x148   : > { %793 = vst.msk [vmem:[#allocation2 + $0x60] sm:$0xff] %vm386_vm1, %v724_v43  ;;  %v774_v50 = vpop.f32.mrb[12].mxu1  ;;  %v2281_v51 = vpop.f32.mrb[13].mxu0  ;;  %v942_v52 = vld [vmem:[#allocation2 + $0x52] sm:$0x1]  ;;  %v959_v53 = vrot.slane %v941_v44, 4  ;;  %v1570_v5 = vsel %vm817_vm3, %v1569_v41, %v1568_v48  ;;  %v1504_v13 = vsel %vm820_vm4, %v1503_v38, %v1502_v56 }
 0x149   : > { %v890_v54 = vrot.slane %v872_v45, 4  ;;  %795 = vst.msk [vmem:[#allocation2 + $0x70] sm:$0xff] %vm386_vm1, %v774_v50  ;;  %v2287_v57 = vpop.f32.mrb[13].mxu1  ;;  %v727_v58 = vpop.f32.mrb[14].mxu0  ;;  %v961_v60 = vrot.slane %v942_v52, 3  ;;  %v1571_v63 = vrot.slane %v1554_v40, 5  ;;  %v1096_v19 = vsel %vm820_vm4, %v1095_v47, %v1094_v62 }
 0x14a   : > { %v873_v61 = vld [vmem:[#allocation2 + $0x51] sm:$0x1]  ;;  %794 = vst.msk [vmem:[#allocation2 + $0x68] sm:$0xff] %vm386_vm1, %v727_v58  ;;  %v777_v0 = vpop.f32.mrb[14].mxu1  ;;  %v2282_v1 = vpop.f32.mrb[15].mxu0  ;;  %v1162_v6 = vrot.slane %v2777_v42, 6  ;;  %v960_v8 = vsel %vm823_vm5, %v959_v53, %v958_v59 }
 0x14b   : > { %v892_v3 = vrot.slane %v873_v61, 3  ;;  %v1010_v4 = vld [vmem:[#allocation2 + $0x43] sm:$0x1]  ;;  %796 = vst.msk [vmem:[#allocation2 + $0x78] sm:$0xff] %vm386_vm1, %v777_v0  ;;  %v2288_v7 = vpop.f32.mrb[15].mxu1  ;;  %v891_v14 = vsel %vm823_vm5, %v890_v54, %v889_v2  ;;  %v1572_v25 = vsel %vm820_vm4, %v1571_v63, %v1570_v5  ;;  %v962_v26 = vsel %vm826_vm6, %v961_v60, %v960_v8 }
 0x14c   : > { %v1011_v9 = vld [vmem:[#allocation2 + $0x53] sm:$0x1]  ;;  %v1028_v11 = vrot.slane %v1010_v4, 4  ;;  %v1487_v12 = vld [vmem:[#allocation2 + $0x4a] sm:$0x1]  ;;  %v1163_v38 = vsel %vm817_vm3, %v1162_v6, %v1161_v49 }
 0x14d   : > { %v1030_v15 = vrot.slane %v1011_v9, 3  ;;  %v1488_v16 = vld [vmem:[#allocation2 + $0x5a] sm:$0x1]  ;;  %v1505_v17 = vrot.slane %v1487_v12, 4  ;;  %v1079_v18 = vld [vmem:[#allocation2 + $0x44] sm:$0x1]  ;;  %v893_v34 = vsel %vm826_vm6, %v892_v3, %v891_v14 }
 0x14e   : > { %v1029_v20 = vsel %vm823_vm5, %v1028_v11, %v1027_v10  ;;  %v1507_v21 = vrot.slane %v1488_v16, 3  ;;  %v1080_v22 = vld [vmem:[#allocation2 + $0x54] sm:$0x1]  ;;  %v1097_v23 = vrot.slane %v1079_v18, 4  ;;  %v1555_v24 = vld [vmem:[#allocation2 + $0x4b] sm:$0x1] }
 0x14f   : > { %v1506_v27 = vsel %vm823_vm5, %v1505_v17, %v1504_v13  ;;  %v1099_v28 = vrot.slane %v1080_v22, 3  ;;  %v1556_v29 = vld [vmem:[#allocation2 + $0x5b] sm:$0x1]  ;;  %v1573_v30 = vrot.slane %v1555_v24, 4  ;;  %v1147_v31 = vld [vmem:[#allocation2 + $0x35] sm:$0x1]  ;;  %v1031_v36 = vsel %vm826_vm6, %v1030_v15, %v1029_v20 }
 0x150   : > { %v943_v32 = vld [vmem:[#allocation2 + $0x62] sm:$0x1]  ;;  %v874_v33 = vld [vmem:[#allocation2 + $0x61] sm:$0x1]  ;;  %v1012_v35 = vld [vmem:[#allocation2 + $0x63] sm:$0x1]  ;;  %v1508_v37 = vsel %vm826_vm6, %v1507_v21, %v1506_v27  ;;  %v1098_v43 = vsel %vm823_vm5, %v1097_v23, %v1096_v19 }
 0x151   : > { %v944_v39 = vld [vmem:[#allocation2 + $0x72] sm:$0x1]  ;;  %v963_v40 = vrot.slane %v943_v32, 2  ;;  %v875_v41 = vld [vmem:[#allocation2 + $0x71] sm:$0x1]  ;;  %v894_v42 = vrot.slane %v874_v33, 2  ;;  %v1574_v44 = vsel %vm823_vm5, %v1573_v30, %v1572_v25  ;;  %v1100_v0 = vsel %vm826_vm6, %v1099_v28, %v1098_v43 }
 0x152   : > { %v965_v45 = vrot.slane %v944_v39, 1  ;;  %v896_v46 = vrot.slane %v875_v41, 1  ;;  %v1013_v47 = vld [vmem:[#allocation2 + $0x73] sm:$0x1]  ;;  %v1032_v48 = vrot.slane %v1012_v35, 2  ;;  %v1575_v50 = vrot.slane %v1556_v29, 3 }
 0x153   : > { %v964_v51 = vsel %vm829_vm7, %v963_v40, %v962_v26  ;;  %v895_v52 = vsel %vm829_vm7, %v894_v42, %v893_v34  ;;  %v1034_v53 = vrot.slane %v1013_v47, 1  ;;  %v1489_v54 = vld [vmem:[#allocation2 + $0x6a] sm:$0x1]  ;;  %v1490_v49 = vld [vmem:[#allocation2 + $0x7a] sm:$0x1]  ;;  %v1164_v55 = vrot.slane %v1147_v31, 5 }
 0x154   : > { %v966_v56 = vsel %vm832_vm8, %v965_v45, %v964_v51  ;;  %v897_v57 = vsel %vm832_vm8, %v896_v46, %v895_v52  ;;  %v1033_v58 = vsel %vm829_vm7, %v1032_v48, %v1031_v36  ;;  %v1509_v59 = vrot.slane %v1489_v54, 2  ;;  %v1081_v60 = vld [vmem:[#allocation2 + $0x64] sm:$0x1]  ;;  %v1082_v61 = vld [vmem:[#allocation2 + $0x74] sm:$0x1] }
 0x155   : > { %967 = vrot.lane.b32.xlu1 %v966_v56, %s2508_s11  ;;  %898 = vrot.lane.b32.xlu0 %v897_v57, %s2509_s13  ;;  %v1035_v62 = vsel %vm832_vm8, %v1034_v53, %v1033_v58  ;;  %v1511_v63 = vrot.slane %v1490_v49, 1  ;;  %v1101_v1 = vrot.slane %v1081_v60, 2  ;;  %v1557_v2 = vld [vmem:[#allocation2 + $0x6b] sm:$0x1]  ;;  %v1103_v4 = vrot.slane %v1082_v61, 1 }
 0x156   : > { %v1510_v3 = vsel %vm829_vm7, %v1509_v59, %v1508_v37  ;;  %v1558_v5 = vld [vmem:[#allocation2 + $0x7b] sm:$0x1]  ;;  %v1576_v6 = vsel %vm826_vm6, %v1575_v50, %v1574_v44  ;;  %v1577_v7 = vrot.slane %v1557_v2, 2  ;;  %v1148_v8 = vld [vmem:[#allocation2 + $0x45] sm:$0x1]  ;;  %v1165_v13 = vsel %vm820_vm4, %v1164_v55, %v1163_v38 }
 0x157   : > { %v1102_v9 = vsel %vm829_vm7, %v1101_v1, %v1100_v0  ;;  %v1579_v10 = vrot.slane %v1558_v5, 1  ;;  %v1149_v11 = vld [vmem:[#allocation2 + $0x55] sm:$0x1]  ;;  %v1150_v12 = vld [vmem:[#allocation2 + $0x65] sm:$0x1]  ;;  %v1166_v14 = vrot.slane %v1148_v8, 4  ;;  %v1512_v15 = vsel %vm832_vm8, %v1511_v63, %v1510_v3 }
 0x158   : > { %v1578_v16 = vsel %vm829_vm7, %v1577_v7, %v1576_v6  ;;  %v1151_v17 = vld [vmem:[#allocation2 + $0x75] sm:$0x1]  ;;  %v1168_v18 = vrot.slane %v1149_v11, 3  ;;  %v1170_v19 = vrot.slane %v1150_v12, 2  ;;  %v1620_v20 = vld [vmem:[#allocation2 + $0x1c] sm:$0x1]  ;;  %v1104_v26 = vsel %vm832_vm8, %v1103_v4, %v1102_v9 }
 0x159   : > { %1036 = vrot.lane.b32.xlu0 %v1035_v62, %s2510_s21  ;;  %1513 = vrot.lane.b32.xlu1 %v1512_v15, %s2508_s11  ;;  %v1167_v21 = vsel %vm823_vm5, %v1166_v14, %v1165_v13  ;;  %v1172_v22 = vrot.slane %v1151_v17, 1  ;;  %v1621_v23 = vld [vmem:[#allocation2 + $0x2c] sm:$0x1]  ;;  %v1622_v24 = vld [vmem:[#allocation2 + $0x3c] sm:$0x1]  ;;  %v1635_v25 = vrot.slane %v1620_v20, 7  ;;  %v1580_v31 = vsel %vm832_vm8, %v1579_v10, %v1578_v16 }
 0x15a   : > { %v1169_v27 = vsel %vm826_vm6, %v1168_v18, %v1167_v21  ;;  %v1623_v28 = vld [vmem:[#allocation2 + $0x4c] sm:$0x1]  ;;  %v1624_v29 = vld [vmem:[#allocation2 + $0x5c] sm:$0x1]  ;;  %v1637_v35 = vrot.slane %v1621_v23, 6  ;;  %v1639_v36 = vrot.slane %v1622_v24, 5 }
 0x15b   : > { %v1625_v30 = vld [vmem:[#allocation2 + $0x6c] sm:$0x1]  ;;  %v1171_v32 = vsel %vm829_vm7, %v1170_v19, %v1169_v27  ;;  %v1626_v34 = vld [vmem:[#allocation2 + $0x7c] sm:$0x1]  ;;  %v1641_v38 = vrot.slane %v1623_v28, 4  ;;  %v1643_v39 = vrot.slane %v1624_v29, 3 }
 0x15c   : > { %v1619_v33 = vld [vmem:[#allocation2 + $0xc] sm:$0x1]  ;;  %v1645_v40 = vrot.slane %v1625_v30, 2  ;;  %v1687_v41 = vld [vmem:[#allocation2 + $0xd] sm:$0x1]  ;;  %v1647_v44 = vrot.slane %v1626_v34, 1  ;;  %v1173_v48 = vsel %vm832_vm8, %v1172_v22, %v1171_v32 }
 0x15d   : > { %v1636_v37 = vsel %vm814_vm2, %v1635_v25, %v1619_v33  ;;  %v1688_v42 = vld [vmem:[#allocation2 + $0x1d] sm:$0x1]  ;;  %1105 = vrot.lane.b32.xlu0 %v1104_v26, %s2511_s18  ;;  %1581 = vrot.lane.b32.xlu1 %v1580_v31, %s2510_s21  ;;  %v1689_v45 = vld [vmem:[#allocation2 + $0x2d] sm:$0x1]  ;;  %v1415_v62 = vld [vmem:[#allocation2 + $0x9] sm:$0x1] }
 0x15e   : > { %v1638_v43 = vsel %vm817_vm3, %v1637_v35, %v1636_v37  ;;  %v1690_v46 = vld [vmem:[#allocation2 + $0x3d] sm:$0x1]  ;;  %v1703_v47 = vrot.slane %v1688_v42, 7  ;;  %v1691_v51 = vld [vmem:[#allocation2 + $0x4d] sm:$0x1]  ;;  %v1705_v56 = vrot.slane %v1689_v45, 6 }
 0x15f   : > { %v1640_v50 = vsel %vm820_vm4, %v1639_v36, %v1638_v43  ;;  %v1692_v52 = vld [vmem:[#allocation2 + $0x5d] sm:$0x1]  ;;  %v1693_v53 = vld [vmem:[#allocation2 + $0x6d] sm:$0x1]  ;;  %v1707_v57 = vrot.slane %v1690_v46, 5  ;;  %v1709_v59 = vrot.slane %v1691_v51, 4 }
 0x160   : > { %v1642_v54 = vsel %vm823_vm5, %v1641_v38, %v1640_v50  ;;  %v1694_v49 = vld [vmem:[#allocation2 + $0x7d] sm:$0x1]  ;;  %v1704_v55 = vsel %vm814_vm2, %v1703_v47, %v1687_v41  ;;  %v1711_v60 = vrot.slane %v1692_v52, 3  ;;  %v1713_v61 = vrot.slane %v1693_v53, 2  ;;  %v1416_v63 = vld [vmem:[#allocation2 + $0x19] sm:$0x1] }
 0x161   : > { %v1644_v58 = vsel %vm826_vm6, %v1643_v39, %v1642_v54  ;;  %1174 = vrot.lane.b32.xlu0 %v1173_v48, %s2512_s19  ;;  %v1706_v1 = vsel %vm817_vm3, %v1705_v56, %v1704_v55  ;;  %v1715_v2 = vrot.slane %v1694_v49, 1  ;;  %v1417_v3 = vld [vmem:[#allocation2 + $0x29] sm:$0x1]  ;;  %v1418_v4 = vld [vmem:[#allocation2 + $0x39] sm:$0x1]  ;;  %v1431_v5 = vrot.slane %v1416_v63, 7 }
 0x162   : > { %v1646_v0 = vsel %vm829_vm7, %v1645_v40, %v1644_v58  ;;  %v1708_v7 = vsel %vm820_vm4, %v1707_v57, %v1706_v1  ;;  %v1419_v8 = vld [vmem:[#allocation2 + $0x49] sm:$0x1]  ;;  %v1420_v9 = vld [vmem:[#allocation2 + $0x59] sm:$0x1]  ;;  %v1433_v14 = vrot.slane %v1417_v3, 6  ;;  %v1435_v15 = vrot.slane %v1418_v4, 5 }
 0x163   : > { %v1648_v6 = vsel %vm832_vm8, %v1647_v44, %v1646_v0  ;;  %v1421_v10 = vld [vmem:[#allocation2 + $0x69] sm:$0x1]  ;;  %v1710_v11 = vsel %vm823_vm5, %v1709_v59, %v1708_v7  ;;  %v1422_v12 = vld [vmem:[#allocation2 + $0x79] sm:$0x1]  ;;  %v1432_v13 = vsel %vm814_vm2, %v1431_v5, %v1415_v62  ;;  %v1437_v17 = vrot.slane %v1419_v8, 4 }
 0x164   : > { %1649 = vrot.lane.b32.xlu1 %v1648_v6, %s2511_s18  ;;  %v1712_v16 = vsel %vm826_vm6, %v1711_v60, %v1710_v11  ;;  %v1439_v18 = vrot.slane %v1420_v9, 3  ;;  %v1441_v19 = vrot.slane %v1421_v10, 2  ;;  %v1755_v20 = vld [vmem:[#allocation2 + $0xe] sm:$0x1]  ;;  %v1756_v21 = vld [vmem:[#allocation2 + $0x1e] sm:$0x1]  ;;  %v1434_v23 = vsel %vm817_vm3, %v1433_v14, %v1432_v13 }
 0x165   : > { %v1714_v22 = vsel %vm829_vm7, %v1713_v61, %v1712_v16  ;;  %v1443_v24 = vrot.slane %v1422_v12, 1  ;;  %v1757_v25 = vld [vmem:[#allocation2 + $0x2e] sm:$0x1]  ;;  %v1758_v26 = vld [vmem:[#allocation2 + $0x3e] sm:$0x1]  ;;  %v1771_v27 = vrot.slane %v1756_v21, 7  ;;  %v1436_v29 = vsel %vm820_vm4, %v1435_v15, %v1434_v23 }
 0x166   : > { %v1716_v28 = vsel %vm832_vm8, %v1715_v2, %v1714_v22  ;;  %v1759_v30 = vld [vmem:[#allocation2 + $0x4e] sm:$0x1]  ;;  %v1760_v31 = vld [vmem:[#allocation2 + $0x5e] sm:$0x1]  ;;  %v1438_v33 = vsel %vm823_vm5, %v1437_v17, %v1436_v29  ;;  %v1773_v36 = vrot.slane %v1757_v25, 6  ;;  %v1775_v37 = vrot.slane %v1758_v26, 5 }
 0x167   : > { %v1761_v32 = vld [vmem:[#allocation2 + $0x6e] sm:$0x1]  ;;  %v1762_v34 = vld [vmem:[#allocation2 + $0x7e] sm:$0x1]  ;;  %v1772_v35 = vsel %vm814_vm2, %v1771_v27, %v1755_v20  ;;  %v1440_v38 = vsel %vm826_vm6, %v1439_v18, %v1438_v33  ;;  %v1777_v39 = vrot.slane %v1759_v30, 4  ;;  %v1779_v40 = vrot.slane %v1760_v31, 3 }
 0x168   : > { %1717 = vrot.lane.b32.xlu1 %v1716_v28, %s2512_s19  ;;  %v1781_v41 = vrot.slane %v1761_v32, 2  ;;  %v1213_v42 = vld [vmem:[#allocation2 + $0x6] sm:$0x1]  ;;  %v1214_v43 = vld [vmem:[#allocation2 + $0x16] sm:$0x1]  ;;  %v1442_v44 = vsel %vm829_vm7, %v1441_v19, %v1440_v38  ;;  %v1774_v45 = vsel %vm817_vm3, %v1773_v36, %v1772_v35  ;;  %v1783_v46 = vrot.slane %v1762_v34, 1 }
 0x169   : > { %v1215_v47 = vld [vmem:[#allocation2 + $0x26] sm:$0x1]  ;;  %v1216_v48 = vld [vmem:[#allocation2 + $0x36] sm:$0x1]  ;;  %v1229_v50 = vrot.slane %v1214_v43, 7  ;;  %v1444_v51 = vsel %vm832_vm8, %v1443_v24, %v1442_v44  ;;  %v1776_v52 = vsel %vm820_vm4, %v1775_v37, %v1774_v45 }
 0x16a   : > { %v1217_v53 = vld [vmem:[#allocation2 + $0x46] sm:$0x1]  ;;  %v1218_v54 = vld [vmem:[#allocation2 + $0x56] sm:$0x1]  ;;  %1445 = vrot.lane.b32.xlu0 %v1444_v51, %s2509_s13  ;;  %v1778_v55 = vsel %vm823_vm5, %v1777_v39, %v1776_v52  ;;  %v1231_v58 = vrot.slane %v1215_v47, 6  ;;  %v1233_v59 = vrot.slane %v1216_v48, 5 }
 0x16b   : > { %v1219_v49 = vld [vmem:[#allocation2 + $0x66] sm:$0x1]  ;;  %v1220_v56 = vld [vmem:[#allocation2 + $0x76] sm:$0x1]  ;;  %v1230_v57 = vsel %vm814_vm2, %v1229_v50, %v1213_v42  ;;  %v1780_v60 = vsel %vm826_vm6, %v1779_v40, %v1778_v55  ;;  %v1235_v61 = vrot.slane %v1217_v53, 4  ;;  %v1237_v62 = vrot.slane %v1218_v54, 3 }
 0x16c   : > { %v1239_v63 = vrot.slane %v1219_v49, 2  ;;  %v1823_v0 = vld [vmem:[#allocation2 + $0xf] sm:$0x1]  ;;  %v1824_v1 = vld [vmem:[#allocation2 + $0x1f] sm:$0x1]  ;;  %v1782_v2 = vsel %vm829_vm7, %v1781_v41, %v1780_v60  ;;  %v1232_v3 = vsel %vm817_vm3, %v1231_v58, %v1230_v57  ;;  %v1241_v4 = vrot.slane %v1220_v56, 1 }
 0x16d   : > { %v1825_v5 = vld [vmem:[#allocation2 + $0x2f] sm:$0x1]  ;;  %v1826_v6 = vld [vmem:[#allocation2 + $0x3f] sm:$0x1]  ;;  %v1839_v7 = vrot.slane %v1824_v1, 7  ;;  %v1784_v8 = vsel %vm832_vm8, %v1783_v46, %v1782_v2  ;;  %v1234_v9 = vsel %vm820_vm4, %v1233_v59, %v1232_v3 }
 0x16e   : > { %v1827_v10 = vld [vmem:[#allocation2 + $0x4f] sm:$0x1]  ;;  %v1828_v11 = vld [vmem:[#allocation2 + $0x5f] sm:$0x1]  ;;  %1785 = vrot.lane.b32.xlu1 %v1784_v8, %s3317_s14  ;;  %v1236_v13 = vsel %vm823_vm5, %v1235_v61, %v1234_v9  ;;  %v1841_v16 = vrot.slane %v1825_v5, 6  ;;  %v1843_v17 = vrot.slane %v1826_v6, 5 }
 0x16f   : > { %v1829_v12 = vld [vmem:[#allocation2 + $0x6f] sm:$0x1]  ;;  %v1830_v14 = vld [vmem:[#allocation2 + $0x7f] sm:$0x1]  ;;  %v1840_v15 = vsel %vm814_vm2, %v1839_v7, %v1823_v0  ;;  %v1238_v18 = vsel %vm826_vm6, %v1237_v62, %v1236_v13  ;;  %v1845_v19 = vrot.slane %v1827_v10, 4  ;;  %v1847_v20 = vrot.slane %v1828_v11, 3 }
 0x170   : > { %v1849_v21 = vrot.slane %v1829_v12, 2  ;;  %v1283_v22 = vld [vmem:[#allocation2 + $0x17] sm:$0x1]  ;;  %v1240_v23 = vsel %vm829_vm7, %v1239_v63, %v1238_v18  ;;  %v1842_v24 = vsel %vm817_vm3, %v1841_v16, %v1840_v15  ;;  %v1851_v25 = vrot.slane %v1830_v14, 1  ;;  %v1284_v26 = vld [vmem:[#allocation2 + $0x27] sm:$0x1] }
 0x171   : > { %v1285_v27 = vld [vmem:[#allocation2 + $0x37] sm:$0x1]  ;;  %v1298_v28 = vrot.slane %v1283_v22, 7  ;;  %v1242_v29 = vsel %vm832_vm8, %v1241_v4, %v1240_v23  ;;  %v1844_v30 = vsel %vm820_vm4, %v1843_v17, %v1842_v24  ;;  %v1286_v31 = vld [vmem:[#allocation2 + $0x47] sm:$0x1]  ;;  %v1300_v37 = vrot.slane %v1284_v26, 6 }
 0x172   : > { %v1287_v32 = vld [vmem:[#allocation2 + $0x57] sm:$0x1]  ;;  %v1288_v33 = vld [vmem:[#allocation2 + $0x67] sm:$0x1]  ;;  %1243 = vrot.lane.b32.xlu0 %v1242_v29, %s3317_s14  ;;  %v1846_v34 = vsel %vm823_vm5, %v1845_v19, %v1844_v30  ;;  %v1302_v38 = vrot.slane %v1285_v27, 5  ;;  %v1304_v41 = vrot.slane %v1286_v31, 4 }
 0x173   : > { %v1282_v35 = vld [vmem:[#allocation2 + $0x7] sm:$0x1]  ;;  %v1289_v36 = vld [vmem:[#allocation2 + $0x77] sm:$0x1]  ;;  %v1848_v39 = vsel %vm826_vm6, %v1847_v20, %v1846_v34  ;;  %v1306_v42 = vrot.slane %v1287_v32, 3  ;;  %v1308_v46 = vrot.slane %v1288_v33, 2 }
 0x174   : > { %v1299_v40 = vsel %vm814_vm2, %v1298_v28, %v1282_v35  ;;  %v798_v43 = vld [vmem:[#allocation2 + $0x10] sm:$0x1]  ;;  %v1850_v44 = vsel %vm829_vm7, %v1849_v21, %v1848_v39  ;;  %v797_v47 = vld [vmem:[#allocation2] sm:$0x1]  ;;  %v1310_v54 = vrot.slane %v1289_v36, 1  ;;  %v2515_v32 = vmov 0  }
 0x175   : > { %v1301_v45 = vsel %vm817_vm3, %v1300_v37, %v1299_v40  ;;  %v799_v48 = vld [vmem:[#allocation2 + $0x20] sm:$0x1]  ;;  %v800_v50 = vld [vmem:[#allocation2 + $0x30] sm:$0x1]  ;;  %v813_v51 = vrot.slane %v798_v43, 7  ;;  %v1852_v52 = vsel %vm832_vm8, %v1851_v25, %v1850_v44  ;;  %1945 = vmatprep.mubr.bf16.mxu0 %v2515_v32  ;;  %2360 = vset.pattern.permute.xlu0 %v2515_v32  ;;  %v2214_v37 = vld [vmem:[%s3307_s4 + $0x8] sm:$0xff] }
 0x176   : > { %v1303_v53 = vsel %vm820_vm4, %v1302_v38, %v1301_v45  ;;  %v801_v49 = vld [vmem:[#allocation2 + $0x40] sm:$0x1]  ;;  %v802_v55 = vld [vmem:[#allocation2 + $0x50] sm:$0x1]  ;;  %1853 = vrot.lane.b32.xlu1 %v1852_v52, %s2514_s17  ;;  %v816_v58 = vrot.slane %v799_v48, 6  ;;  %v819_v59 = vrot.slane %v800_v50, 5  ;;  %2073 = vmatprep.mubr.bf16.mxu1 %v2515_v32 }
 0x177   : > { %v1305_v56 = vsel %vm823_vm5, %v1304_v41, %v1303_v53  ;;  %v804_v57 = vld [vmem:[#allocation2 + $0x70] sm:$0x1]  ;;  %v803_v60 = vld [vmem:[#allocation2 + $0x60] sm:$0x1]  ;;  %v815_v62 = vsel %vm814_vm2, %v813_v51, %v797_v47  ;;  %v822_v63 = vrot.slane %v801_v49, 4  ;;  %v825_v0 = vrot.slane %v802_v55, 3  ;;  %2361 = vset.pattern.permute.xlu1 %v2515_v32 }
 0x178   : > { %v1307_v61 = vsel %vm826_vm6, %v1306_v42, %v1305_v56  ;;  %v1352_v1 = vld [vmem:[#allocation2 + $0x18] sm:$0x1]  ;;  %v818_v3 = vsel %vm817_vm3, %v816_v58, %v815_v62  ;;  %v828_v4 = vrot.slane %v803_v60, 2  ;;  %v1353_v5 = vld [vmem:[#allocation2 + $0x28] sm:$0x1]  ;;  %v831_v9 = vrot.slane %v804_v57, 1 }
 0x179   : > { %v1309_v2 = vsel %vm829_vm7, %v1308_v46, %v1307_v61  ;;  %v1354_v6 = vld [vmem:[#allocation2 + $0x38] sm:$0x1]  ;;  %v821_v8 = vsel %vm820_vm4, %v819_v59, %v818_v3  ;;  %v1355_v10 = vld [vmem:[#allocation2 + $0x48] sm:$0x1]  ;;  %v1367_v14 = vrot.slane %v1352_v1, 7  ;;  %v1369_v15 = vrot.slane %v1353_v5, 6 }
 0x17a   : > { %v1311_v7 = vsel %vm832_vm8, %v1310_v54, %v1309_v2  ;;  %v1356_v11 = vld [vmem:[#allocation2 + $0x58] sm:$0x1]  ;;  %v824_v12 = vsel %vm823_vm5, %v822_v63, %v821_v8  ;;  %v1351_v13 = vld [vmem:[#allocation2 + $0x8] sm:$0x1]  ;;  %v1371_v18 = vrot.slane %v1354_v6, 5  ;;  %v1373_v19 = vrot.slane %v1355_v10, 4 }
 0x17b   : > { %1312 = vrot.lane.b32.xlu0 %v1311_v7, %s2514_s17  ;;  %v827_v16 = vsel %vm826_vm6, %v825_v0, %v824_v12  ;;  %v1358_v17 = vld [vmem:[#allocation2 + $0x78] sm:$0x1]  ;;  %v1357_v20 = vld [vmem:[#allocation2 + $0x68] sm:$0x1]  ;;  %v1368_v22 = vsel %vm814_vm2, %v1367_v14, %v1351_v13  ;;  %v1375_v23 = vrot.slane %v1356_v11, 3  ;;  %v1896_v27 = vld [vmem:[%s3306_s3] sm:$0xff] }
 0x17c   : > { %v830_v21 = vsel %vm829_vm7, %v828_v4, %v827_v16  ;;  %v1370_v25 = vsel %vm817_vm3, %v1369_v15, %v1368_v22  ;;  %v1377_v26 = vrot.slane %v1357_v20, 2  ;;  %v1379_v29 = vrot.slane %v1358_v17, 1  ;;  %v1970_v30 = vld [vmem:[%s3307_s4] sm:$0xff]  ;;  %v2215_v35 = vld [vmem:[%s3307_s4 + $0x10] sm:$0xff] }
 0x17d   : > { %v833_v24 = vsel %vm832_vm8, %v831_v9, %v830_v21  ;;  %v1372_v28 = vsel %vm820_vm4, %v1371_v18, %v1370_v25  ;;  %1973 = vperm.xlu1 %2361, %v1970_v30   ;;  %v2013_v38 = vld [vmem:[%s3308_s5] sm:$0xff]  ;;  %v904_v59 = vld [vmem:[%s2705_s15 + $0x11] sm:$0x1]  ;;  %v973_v60 = vld [vmem:[%s2705_s15 + $0x12] sm:$0x1] }
 0x17e   : > { %835 = vst.msk [vmem:[#allocation3] sm:$0xff] %vm386_vm1, %v833_v24  ;;  %v1374_v31 = vsel %vm823_vm5, %v1373_v19, %v1372_v28  ;;  %v1891_v58 = vld [vmem:[%s3305_s2] sm:$0xf]  ;;  %v919_v62 = vrot.slane %v904_v59, 7  ;;  %v988_v1 = vrot.slane %v973_v60, 7 }
 0x17f   : > { %v1376_v33 = vsel %vm826_vm6, %v1375_v23, %v1374_v31  ;;  %1899 = vperm.xlu0 %2360, %v1896_v27   ;;  %v905_v61 = vld [vmem:[%s2705_s15 + $0x21] sm:$0x1]  ;;  %v974_v0 = vld [vmem:[%s2705_s15 + $0x22] sm:$0x1]  ;;  %v906_v3 = vld [vmem:[%s2705_s15 + $0x31] sm:$0x1] }
 0x180   : > { %v1378_v34 = vsel %vm829_vm7, %v1377_v26, %v1376_v33  ;;  %v903_v63 = vld [vmem:[%s2705_s15 + $0x1] sm:$0x1]  ;;  %v972_v2 = vld [vmem:[%s2705_s15 + $0x2] sm:$0x1]  ;;  %v921_v4 = vrot.slane %v905_v61, 6  ;;  %v990_v7 = vrot.slane %v974_v0, 6 }
 0x181   : > { %v1380_v36 = vsel %vm832_vm8, %v1379_v29, %v1378_v34  ;;  %1984 = vperm.xlu1 %2361, %v2214_v37   ;;  %v920_v5 = vsel %vm814_vm2, %v919_v62, %v903_v63  ;;  %v975_v6 = vld [vmem:[%s2705_s15 + $0x32] sm:$0x1]  ;;  %v1042_v8 = vld [vmem:[%s2705_s15 + $0x13] sm:$0x1]  ;;  %v989_v9 = vsel %vm814_vm2, %v988_v1, %v972_v2  ;;  %v907_v10 = vld [vmem:[%s2705_s15 + $0x41] sm:$0x1] }
 0x182   : > { %1382 = vst.msk [vmem:[#allocation3 + $0x8] sm:$0xff] %vm386_vm1, %v1380_v36  ;;  %v908_v11 = vld [vmem:[%s2705_s15 + $0x51] sm:$0x1]  ;;  %v923_v12 = vrot.slane %v906_v3, 5  ;;  %v922_v13 = vsel %vm817_vm3, %v921_v4, %v920_v5  ;;  %v976_v14 = vld [vmem:[%s2705_s15 + $0x42] sm:$0x1]  ;;  %v991_v20 = vsel %vm817_vm3, %v990_v7, %v989_v9 }
 0x183   : > { %2006 = vperm.xlu0 %2360, %v2215_v35   ;;  %v992_v15 = vrot.slane %v975_v6, 5  ;;  %v1043_v16 = vld [vmem:[%s2705_s15 + $0x23] sm:$0x1]  ;;  %v1057_v17 = vrot.slane %v1042_v8, 7  ;;  %v909_v18 = vld [vmem:[%s2705_s15 + $0x61] sm:$0x1] }
 0x184   : > { %v2959_v19 = vld [vmem:[%s2705_s15 + $0x71] sm:$0x1]  ;;  %v1041_v21 = vld [vmem:[%s2705_s15 + $0x3] sm:$0x1]  ;;  %v925_v22 = vrot.slane %v907_v10, 4  ;;  %v924_v25 = vsel %vm820_vm4, %v923_v12, %v922_v13  ;;  %v994_v26 = vrot.slane %v976_v14, 4 }
 0x185   : > { %2016 = vperm.xlu1 %2361, %v2013_v38   ;;  %v977_v23 = vld [vmem:[%s2705_s15 + $0x52] sm:$0x1]  ;;  %v978_v24 = vld [vmem:[%s2705_s15 + $0x62] sm:$0x1]  ;;  %v1044_v27 = vld [vmem:[%s2705_s15 + $0x33] sm:$0x1]  ;;  %v993_v30 = vsel %vm820_vm4, %v992_v15, %v991_v20  ;;  %v1058_v31 = vsel %vm814_vm2, %v1057_v17, %v1041_v21 }
 0x186   : > { %v1059_v28 = vrot.slane %v1043_v16, 6  ;;  %v927_v29 = vrot.slane %v908_v11, 3  ;;  %v1111_v32 = vld [vmem:[%s2705_s15 + $0x14] sm:$0x1]  ;;  %v929_v33 = vrot.slane %v909_v18, 2  ;;  %v931_v34 = vrot.slane %v2959_v19, 1 }
 0x187   : > { %v2972_v35 = vld [vmem:[%s2705_s15 + $0x72] sm:$0x1]  ;;  %v996_v36 = vrot.slane %v977_v23, 3  ;;  %v998_v37 = vrot.slane %v978_v24, 2  ;;  %v2990_v59 = vld [vmem:[%s2705_s15 + $0x73] sm:$0x1] }
 0x188   : > { %v1113_v1 = vld [vmem:[%s2705_s15 + $0x34] sm:$0x1]  ;;  %v1114_v2 = vld [vmem:[%s2705_s15 + $0x44] sm:$0x1]  ;;  %v1181_v7 = vld [vmem:[%s2705_s15 + $0x25] sm:$0x1] }
 0x189   : > { %v3002_v5 = vld [vmem:[%s2705_s15 + $0x54] sm:$0x1]  ;;  %v1179_v10 = vld [vmem:[%s2705_s15 + $0x5] sm:$0x1]  ;;  %v1182_v11 = vld [vmem:[%s2705_s15 + $0x35] sm:$0x1] }
 0x18a   : > { %v1249_v12 = vld [vmem:[%s2705_s15 + $0x16] sm:$0x1]  ;;  %v1069_v15 = vrot.slane %v2990_v59, 1  ;;  %v1130_v16 = vrot.slane %v1113_v1, 5  ;;  %v3016_v17 = vld [vmem:[%s2705_s15 + $0x64] sm:$0x1] }
 0x18b   : > { %v1132_v20 = vrot.slane %v1114_v2, 4  ;;  %v1134_v21 = vrot.slane %v3002_v5, 3  ;;  %v1183_v23 = vld [vmem:[%s2705_s15 + $0x45] sm:$0x1]  ;;  %v1136_v19 = vrot.slane %v3016_v17, 2 }
 0x1c7   : > { %v968_v39 = vpop.permute.xlu1 %967  ;;  %v899_v40 = vpop.permute.xlu0 %898 }
 0x1c8   : > { %902 = vst.msk [vmem:[#allocation3] sm:$0xff] %vm901_vm9, %v899_v40  ;;  %v926_v40 = vsel %vm823_vm5, %v925_v22, %v924_v25  ;;  %v1197_v22 = vrot.slane %v1181_v7, 6  ;;  %v1199_v25 = vrot.slane %v1182_v11, 5 }
 0x1c9   : > { %971 = vst.msk [vmem:[#allocation3] sm:$0xff] %vm970_vm10, %v968_v39 }
 0x1cb   : > { %v1037_v41 = vpop.permute.xlu0 %1036  ;;  %v1514_v42 = vpop.permute.xlu1 %1513 }
 0x1cc   : > { %1040 = vst.msk [vmem:[#allocation3] sm:$0xff] %vm1039_vm11, %v1037_v41  ;;  %v1045_v41 = vld [vmem:[%s2705_s15 + $0x43] sm:$0x1] }
 0x1cd   : > { %v1063_v60 = vrot.slane %v1045_v41, 4 }
 0x1cf   : > { %v1106_v43 = vpop.permute.xlu0 %1105  ;;  %v1582_v44 = vpop.permute.xlu1 %1581 }
 0x1d0   : > { %1109 = vst.msk [vmem:[#allocation3] sm:$0xff] %vm1108_vm12, %v1106_v43  ;;  %v1061_v43 = vrot.slane %v1044_v27, 5  ;;  %v1250_v27 = vld [vmem:[%s2705_s15 + $0x26] sm:$0x1] }
 0x1d3   : > { %v1175_v45 = vpop.permute.xlu0 %1174 }
 0x1d4   : > { %1178 = vst.msk [vmem:[#allocation3] sm:$0xff] %vm1177_vm13, %v1175_v45 }
 0x1d6   : > { %v1650_v46 = vpop.permute.xlu1 %1649 }
 0x1da   : > { %v1718_v47 = vpop.permute.xlu1 %1717 }
 0x1dc   : > { %v1446_v48 = vpop.permute.xlu0 %1445 }
 0x1dd   : > { %1448 = vst.msk [vmem:[#allocation3 + $0x8] sm:$0xff] %vm901_vm9, %v1446_v48  ;;  %v1060_v48 = vsel %vm817_vm3, %v1059_v28, %v1058_v31  ;;  %v1264_v28 = vrot.slane %v1249_v12, 7  ;;  %v837_v31 = vld [vmem:[%s2705_s15 + $0x10] sm:$0x1] }
 0x1de   : > { %1516 = vst.msk [vmem:[#allocation3 + $0x8] sm:$0xff] %vm970_vm10, %v1514_v42  ;;  %v1046_v42 = vld [vmem:[%s2705_s15 + $0x53] sm:$0x1]  ;;  %v1062_v0 = vsel %vm820_vm4, %v1061_v43, %v1060_v48  ;;  %v842_v43 = vld [vmem:[%s2705_s15 + $0x60] sm:$0x1] }
 0x1df   : > { %1584 = vst.msk [vmem:[#allocation3 + $0x8] sm:$0xff] %vm1039_vm11, %v1582_v44  ;;  %v1065_v61 = vrot.slane %v1046_v42, 3  ;;  %v1064_v14 = vsel %vm823_vm5, %v1063_v60, %v1062_v0  ;;  %v1266_v42 = vrot.slane %v1250_v27, 6  ;;  %v862_v59 = vrot.slane %v842_v43, 2 }
 0x1e0   : > { %1652 = vst.msk [vmem:[#allocation3 + $0x8] sm:$0xff] %vm1108_vm12, %v1650_v46  ;;  %v1786_v50 = vpop.permute.xlu1 %1785  ;;  %v995_v46 = vsel %vm823_vm5, %v994_v26, %v993_v30  ;;  %v1248_v26 = vld [vmem:[%s2705_s15 + $0x6] sm:$0x1]  ;;  %v836_v30 = vld [vmem:[%s2705_s15] sm:$0x1] }
 0x1e1   : > { %1720 = vst.msk [vmem:[#allocation3 + $0x8] sm:$0xff] %vm1177_vm13, %v1718_v47  ;;  %v2979_v47 = vld [vmem:[%s2705_s15 + $0x63] sm:$0x1]  ;;  %v997_v63 = vsel %vm826_vm6, %v996_v36, %v995_v46  ;;  %v1066_v36 = vsel %vm826_vm6, %v1065_v61, %v1064_v14  ;;  %v843_v46 = vld [vmem:[%s2705_s15 + $0x70] sm:$0x1] }
 0x1e2   : > { %1788 = vst.msk [vmem:[#allocation3 + $0x8] sm:$0xff] %vm1246_vm14, %v1786_v50  ;;  %v1112_v50 = vld [vmem:[%s2705_s15 + $0x24] sm:$0x1]  ;;  %v1067_v4 = vrot.slane %v2979_v47, 2  ;;  %v999_v13 = vsel %vm829_vm7, %v998_v37, %v997_v63  ;;  %v1117_v61 = vld [vmem:[%s2705_s15 + $0x74] sm:$0x1] }
 0x1e3   : > { %v1128_v3 = vrot.slane %v1112_v50, 6  ;;  %v864_v1 = vrot.slane %v843_v46, 1  ;;  %v1138_v11 = vrot.slane %v1117_v61, 1  ;;  %v1517_v46 = vld [vmem:[%s2705_s15 + $0xa] sm:$0x1] }
 0x1e4   : > { %v1244_v51 = vpop.permute.xlu0 %1243  ;;  %v1068_v60 = vsel %vm829_vm7, %v1067_v4, %v1066_v36  ;;  %v1450_v36 = vld [vmem:[%s2705_s15 + $0x19] sm:$0x1] }
 0x1e5   : > { %1247 = vst.msk [vmem:[#allocation3] sm:$0xff] %vm1246_vm14, %v1244_v51  ;;  %v1126_v51 = vrot.slane %v1111_v32, 7  ;;  %v838_v32 = vld [vmem:[%s2705_s15 + $0x20] sm:$0x1]  ;;  %v1465_v43 = vrot.slane %v1450_v36, 7 }
 0x1e6   : > { %v1656_v36 = vld [vmem:[%s2705_s15 + $0x3c] sm:$0x1] }
 0x1e8   : > { %v1854_v52 = vpop.permute.xlu1 %1853 }
 0x1e9   : > { %1856 = vst.msk [vmem:[#allocation3 + $0x8] sm:$0xff] %vm3319_vm15, %v1854_v52 }
 0x1ed   : > { %v1313_v53 = vpop.permute.xlu0 %1312 }
 0x1ee   : > { %1316 = vst.msk [vmem:[#allocation3] sm:$0xff] %vm3319_vm15, %v1313_v53  ;;  %vm1902_vm15 = vcmask 64512  }
 0x1f0   : > { %v1893_v54 = vld [vmem:[#allocation3 + $0x8] sm:$0xff] }
 0x1f1   : > { %v1895_v49 = vpack.c.bf16 %v1893_v54, %v1893_v54  ;;  %v1000_v54 = vrot.slane %v2972_v35, 1 }
 0x1f3   : > { %2212 = vmatprep.subr.msk.bf16.mxu0 %vm1906_vm0, %v1895_v49  ;;  %v1110_v49 = vld [vmem:[%s2705_s15 + $0x4] sm:$0x1]  ;;  %v1001_v35 = vsel %vm832_vm8, %v1000_v54, %v999_v13 }
 0x1f4   : > { %v1127_v6 = vsel %vm814_vm2, %v1126_v51, %v1110_v49  ;;  %v1184_v51 = vld [vmem:[%s2705_s15 + $0x55] sm:$0x1] }
 0x1f5   : > { %v1892_v55 = vld [vmem:[#allocation3] sm:$0xff]  ;;  %v1129_v18 = vsel %vm817_vm3, %v1128_v3, %v1127_v6  ;;  %v1203_v5 = vrot.slane %v1184_v51, 3  ;;  %v1518_v51 = vld [vmem:[%s2705_s15 + $0x1a] sm:$0x1] }
 0x1f6   : > { %v1894_v56 = vpack.c.bf16 %v1892_v55, %v1892_v55  ;;  %v1180_v55 = vld [vmem:[%s2705_s15 + $0x15] sm:$0x1]  ;;  %v1131_v37 = vsel %vm820_vm4, %v1130_v16, %v1129_v18  ;;  %v1185_v3 = vld [vmem:[%s2705_s15 + $0x65] sm:$0x1] }
 0x1f7   : > { %v1195_v8 = vrot.slane %v1180_v55, 7  ;;  %v1133_v50 = vsel %vm823_vm5, %v1132_v20, %v1131_v37  ;;  %v1252_v55 = vld [vmem:[%s2705_s15 + $0x46] sm:$0x1]  ;;  %v1186_v16 = vld [vmem:[%s2705_s15 + $0x75] sm:$0x1]  ;;  %v1205_v17 = vrot.slane %v1185_v3, 2 }
 0x1f8   : > { %v1908_v57 = vsel %vm1906_vm0, %v1894_v56, 0  ;;  %v1135_v2 = vsel %vm826_vm6, %v1134_v21, %v1133_v50  ;;  %v1270_v4 = vrot.slane %v1252_v55, 4  ;;  %v1254_v21 = vld [vmem:[%s2705_s15 + $0x66] sm:$0x1]  ;;  %v1451_v37 = vld [vmem:[%s2705_s15 + $0x29] sm:$0x1] }
 0x1f9   : > { %1914 = vmatpush1.bf16.msra.mxu0 %v1908_v57  ;;  %v1196_v24 = vsel %vm814_vm2, %v1195_v8, %v1179_v10  ;;  %v1253_v8 = vld [vmem:[%s2705_s15 + $0x56] sm:$0x1]  ;;  %v1070_v10 = vsel %vm832_vm8, %v1069_v15, %v1068_v60  ;;  %v1137_v14 = vsel %vm829_vm7, %v1136_v19, %v1135_v2  ;;  %v1274_v27 = vrot.slane %v1254_v21, 2  ;;  %v1522_v55 = vld [vmem:[%s2705_s15 + $0x5a] sm:$0x1] }
 0x1fa   : > { %v1198_v41 = vsel %vm817_vm3, %v1197_v22, %v1196_v24  ;;  %v1272_v22 = vrot.slane %v1253_v8, 3  ;;  %v1207_v24 = vrot.slane %v1186_v16, 1  ;;  %v1533_v60 = vrot.slane %v1518_v51, 7  ;;  %v1585_v3 = vld [vmem:[%s2705_s15 + $0xb] sm:$0x1] }
 0x1fb   : > { %v1200_v49 = vsel %vm820_vm4, %v1199_v25, %v1198_v41  ;;  %v1455_v41 = vld [vmem:[%s2705_s15 + $0x69] sm:$0x1]  ;;  %v1541_v2 = vrot.slane %v1522_v55, 3 }
 0x1fc   : > { %2213 = vmatmul.mubr.msk.bf16.vlgmr.msra.gmra.mrb[16].mxu0 %vm1902_vm15, %v1891_v58  ;;  %v928_v58 = vsel %vm826_vm6, %v927_v29, %v926_v40  ;;  %v1251_v29 = vld [vmem:[%s2705_s15 + $0x36] sm:$0x1]  ;;  %v841_v40 = vld [vmem:[%s2705_s15 + $0x50] sm:$0x1] }
 0x1fd   : > { %v930_v9 = vsel %vm829_vm7, %v929_v33, %v928_v58  ;;  %v860_v54 = vrot.slane %v841_v40, 3  ;;  %v1454_v40 = vld [vmem:[%s2705_s15 + $0x59] sm:$0x1] }
 0x1fe   : > { %v1900_v38 = vpop.permute.xlu0 %1899  ;;  %v932_v33 = vsel %vm832_vm8, %v931_v34, %v930_v9  ;;  %v1265_v34 = vsel %vm814_vm2, %v1264_v28, %v1248_v26  ;;  %v1255_v26 = vld [vmem:[%s2705_s15 + $0x76] sm:$0x1] }
 0x1ff   : > { %v1267_v63 = vsel %vm817_vm3, %v1266_v42, %v1265_v34  ;;  %v1456_v42 = vld [vmem:[%s2705_s15 + $0x79] sm:$0x1]  ;;  %v1473_v34 = vrot.slane %v1454_v40, 3 }
 0x200   : > { %v1477_v50 = vrot.slane %v1456_v42, 1  ;;  %v1660_v42 = vld [vmem:[%s2705_s15 + $0x7c] sm:$0x1] }
 0x2cf   : > { %v1947_v39 = vpop.f32.mrb[16].mxu0 }
 0x2d0   : > { %v1948_v44 = vadd.f32 %v1947_v39, %v1900_v38  ;;  %v1949_v45 = vpop.f32.mrb[17].mxu0  ;;  %v840_v39 = vld [vmem:[%s2705_s15 + $0x40] sm:$0x1] }
 0x2d1   : > { %v1950_v52 = vadd.f32 %v1949_v45, %v1900_v38  ;;  %v1951_v53 = vpop.f32.mrb[18].mxu0  ;;  %v839_v38 = vld [vmem:[%s2705_s15 + $0x30] sm:$0x1]  ;;  %v854_v45 = vrot.slane %v838_v32, 6  ;;  %v858_v48 = vrot.slane %v840_v39, 4 }
 0x2d2   : > { %v2986_v56 = vmax.f32 %v1948_v44, 0.0  ;;  %v1952_v57 = vpop.f32.mrb[19].mxu0  ;;  %v852_v44 = vrot.slane %v837_v31, 7  ;;  %v856_v47 = vrot.slane %v839_v38, 5  ;;  %v1452_v38 = vld [vmem:[%s2705_s15 + $0x39] sm:$0x1] }
 0x2d3   : > { %v2992_v62 = vmax.f32 %v1950_v52, 0.0  ;;  %v1201_v52 = vrot.slane %v1183_v23, 4  ;;  %v1268_v57 = vrot.slane %v1251_v29, 5  ;;  %v1139_v23 = vsel %vm832_vm8, %v1138_v11, %v1137_v14  ;;  %v1453_v39 = vld [vmem:[%s2705_s15 + $0x49] sm:$0x1] }
 0x2d4   : > { %1959 = vrot.lane.b32.xlu1 %v2986_v56, %s2509_s13  ;;  %v853_v53 = vsel %vm814_vm2, %v852_v44, %v836_v30  ;;  %v1276_v30 = vrot.slane %v1255_v26, 1  ;;  %v1467_v44 = vrot.slane %v1451_v37, 6  ;;  %v1471_v19 = vrot.slane %v1453_v39, 4  ;;  %v1590_v14 = vld [vmem:[%s2705_s15 + $0x5b] sm:$0x1] }
 0x2d5   : > { %1961 = vrot.lane.b32.xlu0 %v2992_v62, %s2509_s13  ;;  %v855_v58 = vsel %vm817_vm3, %v854_v45, %v853_v53  ;;  %v1202_v7 = vsel %vm823_vm5, %v1201_v52, %v1200_v49  ;;  %v1269_v12 = vsel %vm820_vm4, %v1268_v57, %v1267_v63  ;;  %v1469_v45 = vrot.slane %v1452_v38, 5  ;;  %v1519_v52 = vld [vmem:[%s2705_s15 + $0x2a] sm:$0x1]  ;;  %v1653_v26 = vld [vmem:[%s2705_s15 + $0xc] sm:$0x1] }
 0x2d6   : > { %v857_v0 = vsel %vm820_vm4, %v856_v47, %v855_v58  ;;  %v1204_v20 = vsel %vm826_vm6, %v1203_v5, %v1202_v7  ;;  %v1271_v15 = vsel %vm823_vm5, %v1270_v4, %v1269_v12  ;;  %v1521_v49 = vld [vmem:[%s2705_s15 + $0x4a] sm:$0x1]  ;;  %v1535_v61 = vrot.slane %v1519_v52, 6  ;;  %v1586_v4 = vld [vmem:[%s2705_s15 + $0x1b] sm:$0x1] }
 0x2d7   : > { %v859_v6 = vsel %vm823_vm5, %v858_v48, %v857_v0  ;;  %v1206_v25 = vsel %vm829_vm7, %v1205_v17, %v1204_v20  ;;  %v1273_v28 = vsel %vm826_vm6, %v1272_v22, %v1271_v15  ;;  %v1475_v48 = vrot.slane %v1455_v41, 2  ;;  %v1523_v58 = vld [vmem:[%s2705_s15 + $0x6a] sm:$0x1]  ;;  %v1588_v12 = vld [vmem:[%s2705_s15 + $0x3b] sm:$0x1] }
 0x2d8   : > { %1993 = vrot.lane.b32.xlu1 %v2992_v62, %s2514_s17  ;;  %v861_v9 = vsel %vm826_vm6, %v860_v54, %v859_v6  ;;  %v1208_v29 = vsel %vm832_vm8, %v1207_v24, %v1206_v25  ;;  %v1275_v31 = vsel %vm829_vm7, %v1274_v27, %v1273_v28  ;;  %v1520_v54 = vld [vmem:[%s2705_s15 + $0x3a] sm:$0x1]  ;;  %v1534_v6 = vsel %vm814_vm2, %v1533_v60, %v1517_v46  ;;  %v1592_v20 = vld [vmem:[%s2705_s15 + $0x7b] sm:$0x1]  ;;  %v1657_v37 = vld [vmem:[%s2705_s15 + $0x4c] sm:$0x1] }
 0x2d9   : > { %1991 = vrot.lane.b32.xlu0 %v2986_v56, %s2514_s17  ;;  %v863_v13 = vsel %vm829_vm7, %v862_v59, %v861_v9  ;;  %v1277_v32 = vsel %vm832_vm8, %v1276_v30, %v1275_v31  ;;  %v1524_v59 = vld [vmem:[%s2705_s15 + $0x7a] sm:$0x1]  ;;  %v1537_v0 = vrot.slane %v1520_v54, 5  ;;  %v1543_v7 = vrot.slane %v1523_v58, 2  ;;  %v1587_v9 = vld [vmem:[%s2705_s15 + $0x2b] sm:$0x1] }
 0x2da   : > { %v865_v18 = vsel %vm832_vm8, %v864_v1, %v863_v13  ;;  %v1539_v1 = vrot.slane %v1521_v49, 4  ;;  %v1545_v8 = vrot.slane %v1524_v59, 1  ;;  %v1536_v11 = vsel %vm817_vm3, %v1535_v61, %v1534_v6  ;;  %v1589_v13 = vld [vmem:[%s2705_s15 + $0x4b] sm:$0x1]  ;;  %v1654_v31 = vld [vmem:[%s2705_s15 + $0x1c] sm:$0x1] }
 0x2db   : > { %867 = vst.msk [vmem:[#allocation4] sm:$0xff] %vm386_vm1, %v865_v18  ;;  %v1538_v17 = vsel %vm820_vm4, %v1537_v0, %v1536_v11  ;;  %v1591_v18 = vld [vmem:[%s2705_s15 + $0x6b] sm:$0x1]  ;;  %v1601_v21 = vrot.slane %v1586_v4, 7  ;;  %v1603_v22 = vrot.slane %v1587_v9, 6  ;;  %v1607_v24 = vrot.slane %v1589_v13, 4 }
 0x2dc   : > { %v1540_v15 = vsel %vm823_vm5, %v1539_v1, %v1538_v17  ;;  %v1609_v25 = vrot.slane %v1590_v14, 3  ;;  %v1613_v30 = vrot.slane %v1592_v20, 1  ;;  %v1658_v38 = vld [vmem:[%s2705_s15 + $0x5c] sm:$0x1]  ;;  %v1659_v41 = vld [vmem:[%s2705_s15 + $0x6c] sm:$0x1] }
 0x2dd   : > { %933 = vrot.lane.b32.xlu0 %v932_v33, %s2509_s13  ;;  %v2026_v33 = vld [vmem:[%s3310_s7] sm:$0xff]  ;;  %v1542_v27 = vsel %vm826_vm6, %v1541_v2, %v1540_v15  ;;  %v1602_v28 = vsel %vm814_vm2, %v1601_v21, %v1585_v3  ;;  %v1677_v46 = vrot.slane %v1658_v38, 3  ;;  %v1679_v51 = vrot.slane %v1659_v41, 2  ;;  %v1723_v54 = vld [vmem:[%s2705_s15 + $0x2d] sm:$0x1] }
 0x2de   : > { %v1681_v52 = vrot.slane %v1660_v42, 1  ;;  %v1725_v58 = vld [vmem:[%s2705_s15 + $0x4d] sm:$0x1]  ;;  %v1726_v59 = vld [vmem:[%s2705_s15 + $0x5d] sm:$0x1]  ;;  %v1739_v2 = vrot.slane %v1723_v54, 6 }
 0x2df   : > { %v1728_v0 = vld [vmem:[%s2705_s15 + $0x7d] sm:$0x1]  ;;  %v1743_v6 = vrot.slane %v1725_v58, 4  ;;  %v1791_v13 = vld [vmem:[%s2705_s15 + $0x2e] sm:$0x1] }
 0x2e0   : > { %v1749_v11 = vrot.slane %v1728_v0, 1  ;;  %v1792_v17 = vld [vmem:[%s2705_s15 + $0x3e] sm:$0x1]  ;;  %v1795_v15 = vld [vmem:[%s2705_s15 + $0x6e] sm:$0x1] }
 0x2e1   : > { %1002 = vrot.lane.b32.xlu0 %v1001_v35, %s2508_s11  ;;  %v1449_v35 = vld [vmem:[%s2705_s15 + $0x9] sm:$0x1]  ;;  %v1794_v20 = vld [vmem:[%s2705_s15 + $0x5e] sm:$0x1]  ;;  %v1321_v41 = vld [vmem:[%s2705_s15 + $0x47] sm:$0x1] }
 0x2e2   : > { %v1466_v47 = vsel %vm814_vm2, %v1465_v43, %v1449_v35  ;;  %v1604_v35 = vsel %vm817_vm3, %v1603_v22, %v1602_v28  ;;  %v1669_v43 = vrot.slane %v1654_v31, 7  ;;  %v1322_v42 = vld [vmem:[%s2705_s15 + $0x57] sm:$0x1]  ;;  %v1859_v58 = vld [vmem:[%s2705_s15 + $0x2f] sm:$0x1] }
 0x2e3   : > { %v1468_v53 = vsel %vm817_vm3, %v1467_v44, %v1466_v47  ;;  %v1721_v47 = vld [vmem:[%s2705_s15 + $0xd] sm:$0x1]  ;;  %v1862_v0 = vld [vmem:[%s2705_s15 + $0x5f] sm:$0x1] }
 0x2e4   : > { %v1470_v57 = vsel %vm820_vm4, %v1469_v45, %v1468_v53  ;;  %v1722_v53 = vld [vmem:[%s2705_s15 + $0x1d] sm:$0x1] }
 0x2e5   : > { %1071 = vrot.lane.b32.xlu0 %v1070_v10, %s2510_s21  ;;  %v1472_v63 = vsel %vm823_vm5, %v1471_v19, %v1470_v57  ;;  %v1673_v19 = vrot.slane %v1656_v36, 5  ;;  %v1724_v57 = vld [vmem:[%s2705_s15 + $0x3d] sm:$0x1]  ;;  %v1737_v1 = vrot.slane %v1722_v53, 7  ;;  %v1318_v36 = vld [vmem:[%s2705_s15 + $0x17] sm:$0x1] }
 0x2e6   : > { %v1474_v5 = vsel %vm826_vm6, %v1473_v34, %v1472_v63  ;;  %v1675_v34 = vrot.slane %v1657_v37, 4  ;;  %v1727_v63 = vld [vmem:[%s2705_s15 + $0x6d] sm:$0x1]  ;;  %v1319_v37 = vld [vmem:[%s2705_s15 + $0x27] sm:$0x1] }
 0x2e7   : > { %v1476_v10 = vsel %vm829_vm7, %v1475_v48, %v1474_v5  ;;  %v1741_v5 = vrot.slane %v1724_v57, 5  ;;  %v1738_v9 = vsel %vm814_vm2, %v1737_v1, %v1721_v47  ;;  %v1858_v57 = vld [vmem:[%s2705_s15 + $0x1f] sm:$0x1] }
 0x2e8   : > { %v1478_v16 = vsel %vm832_vm8, %v1477_v50, %v1476_v10  ;;  %v1670_v50 = vsel %vm814_vm2, %v1669_v43, %v1653_v26  ;;  %v1747_v10 = vrot.slane %v1727_v63, 2  ;;  %v1861_v63 = vld [vmem:[%s2705_s15 + $0x4f] sm:$0x1] }
 0x2e9   : > { %1140 = vrot.lane.b32.xlu0 %v1139_v23, %s2511_s18  ;;  %1479 = vrot.lane.b32.xlu1 %v1478_v16, %s2509_s13  ;;  %v1605_v23 = vrot.slane %v1588_v12, 5  ;;  %v1790_v12 = vld [vmem:[%s2705_s15 + $0x1e] sm:$0x1]  ;;  %v1740_v16 = vsel %vm817_vm3, %v1739_v2, %v1738_v9  ;;  %v1879_v9 = vrot.slane %v1861_v63, 4  ;;  %s2195_s13 = sshll.u32 %s2701_s10, 4 }
 0x2ea   : > { %v1742_v22 = vsel %vm820_vm4, %v1741_v5, %v1740_v16  ;;  %v1864_v5 = vld [vmem:[%s2705_s15 + $0x7f] sm:$0x1] }
 0x2eb   : > { %v1606_v40 = vsel %vm820_vm4, %v1605_v23, %v1604_v35  ;;  %v1796_v23 = vld [vmem:[%s2705_s15 + $0x7e] sm:$0x1]  ;;  %v1744_v26 = vsel %vm823_vm5, %v1743_v6, %v1742_v22  ;;  %v1873_v6 = vrot.slane %v1858_v57, 7  ;;  %v1885_v16 = vrot.slane %v1864_v5, 1  ;;  %v1386_v22 = vld [vmem:[%s2705_s15 + $0x38] sm:$0x1] }
 0x2ec   : > { %v1608_v45 = vsel %vm823_vm5, %v1607_v24, %v1606_v40  ;;  %v1805_v24 = vrot.slane %v1790_v12, 7  ;;  %v1817_v35 = vrot.slane %v1796_v23, 1  ;;  %v1320_v40 = vld [vmem:[%s2705_s15 + $0x37] sm:$0x1]  ;;  %v1388_v23 = vld [vmem:[%s2705_s15 + $0x58] sm:$0x1] }
 0x2ed   : > { %1209 = vrot.lane.b32.xlu0 %v1208_v29, %s2512_s19  ;;  %v1611_v29 = vrot.slane %v1591_v18, 2  ;;  %v1610_v48 = vsel %vm826_vm6, %v1609_v25, %v1608_v45  ;;  %v1793_v18 = vld [vmem:[%s2705_s15 + $0x4e] sm:$0x1]  ;;  %v1807_v25 = vrot.slane %v1791_v13, 6  ;;  %v1323_v45 = vld [vmem:[%s2705_s15 + $0x67] sm:$0x1] }
 0x2ee   : > { %v1811_v28 = vrot.slane %v1793_v18, 4  ;;  %v1385_v18 = vld [vmem:[%s2705_s15 + $0x28] sm:$0x1] }
 0x2ef   : > { %v1612_v49 = vsel %vm829_vm7, %v1611_v29, %v1610_v48  ;;  %v1813_v29 = vrot.slane %v1794_v20, 3  ;;  %v1337_v48 = vrot.slane %v1320_v40, 5 }
 0x2f0   : > { %v1614_v60 = vsel %vm832_vm8, %v1613_v30, %v1612_v49  ;;  %v1317_v30 = vld [vmem:[%s2705_s15 + $0x7] sm:$0x1]  ;;  %v1343_v49 = vrot.slane %v1323_v45, 2 }
 0x2f1   : > { %1278 = vrot.lane.b32.xlu0 %v1277_v32, %s3332_s22  ;;  %v1655_v32 = vld [vmem:[%s2705_s15 + $0x2c] sm:$0x1] }
 0x2f2   : > { %v1671_v44 = vrot.slane %v1655_v32, 6 }
 0x2f4   : > { %v1672_v55 = vsel %vm817_vm3, %v1671_v44, %v1670_v50  ;;  %v1339_v50 = vrot.slane %v1321_v41, 4 }
 0x2f5   : > { %2029 = vperm.xlu0 %2360, %v2026_v33   ;;  %v1544_v33 = vsel %vm829_vm7, %v1543_v7, %v1542_v27  ;;  %v1674_v61 = vsel %vm820_vm4, %v1673_v19, %v1672_v55  ;;  %v1745_v7 = vrot.slane %v1726_v59, 3  ;;  %v1809_v27 = vrot.slane %v1792_v17, 5  ;;  %v1324_v19 = vld [vmem:[%s2705_s15 + $0x77] sm:$0x1]  ;;  %v1384_v17 = vld [vmem:[%s2705_s15 + $0x18] sm:$0x1] }
 0x2f6   : > { %v1546_v39 = vsel %vm832_vm8, %v1545_v8, %v1544_v33  ;;  %v1676_v3 = vsel %vm823_vm5, %v1675_v34, %v1674_v61  ;;  %v1789_v8 = vld [vmem:[%s2705_s15 + $0xe] sm:$0x1]  ;;  %v1815_v33 = vrot.slane %v1795_v15, 2  ;;  %v1333_v34 = vrot.slane %v1318_v36, 7  ;;  %v1860_v61 = vld [vmem:[%s2705_s15 + $0x3f] sm:$0x1] }
 0x2f7   : > { %1547 = vrot.lane.b32.xlu1 %v1546_v39, %s2508_s11  ;;  %v1678_v4 = vsel %vm826_vm6, %v1677_v46, %v1676_v3  ;;  %v1746_v31 = vsel %vm826_vm6, %v1745_v7, %v1744_v26  ;;  %v1806_v32 = vsel %vm814_vm2, %v1805_v24, %v1789_v8  ;;  %v1335_v46 = vrot.slane %v1319_v37, 6  ;;  %v1863_v3 = vld [vmem:[%s2705_s15 + $0x6f] sm:$0x1]  ;;  %v1387_v15 = vld [vmem:[%s2705_s15 + $0x48] sm:$0x1] }
 0x2f8   : > { %v1680_v14 = vsel %vm829_vm7, %v1679_v51, %v1678_v4  ;;  %v1748_v38 = vsel %vm829_vm7, %v1747_v10, %v1746_v31  ;;  %v1808_v39 = vsel %vm817_vm3, %v1807_v25, %v1806_v32  ;;  %v1341_v51 = vrot.slane %v1322_v42, 3  ;;  %v1389_v26 = vld [vmem:[%s2705_s15 + $0x68] sm:$0x1] }
 0x2f9   : > { %v1682_v21 = vsel %vm832_vm8, %v1681_v52, %v1680_v14  ;;  %v1750_v43 = vsel %vm832_vm8, %v1749_v11, %v1748_v38  ;;  %v1810_v44 = vsel %vm820_vm4, %v1809_v27, %v1808_v39  ;;  %v1857_v52 = vld [vmem:[%s2705_s15 + $0xf] sm:$0x1]  ;;  %v1334_v54 = vsel %vm814_vm2, %v1333_v34, %v1317_v30  ;;  %v1383_v11 = vld [vmem:[%s2705_s15 + $0x8] sm:$0x1]  ;;  %v1390_v30 = vld [vmem:[%s2705_s15 + $0x78] sm:$0x1]  ;;  %v1974_v34 = vpop.permute.xlu1 %1973 }
 0x2fa   : > { %v1812_v47 = vsel %vm823_vm5, %v1811_v28, %v1810_v44  ;;  %v1345_v55 = vrot.slane %v1324_v19, 1  ;;  %v1875_v7 = vrot.slane %v1859_v58, 6  ;;  %v1877_v4 = vrot.slane %v1860_v61, 5 }
 0x2fb   : > { %1615 = vrot.lane.b32.xlu1 %v1614_v60, %s2510_s21  ;;  %v1814_v53 = vsel %vm826_vm6, %v1813_v29, %v1812_v47  ;;  %v1336_v60 = vsel %vm817_vm3, %v1335_v46, %v1334_v54  ;;  %v1881_v10 = vrot.slane %v1862_v0, 3  ;;  %v1874_v13 = vsel %vm814_vm2, %v1873_v6, %v1857_v52  ;;  %s2224_s21 = sshll.u32 %s2583_s9, 8  ;;  %s2516_s9 = smov [#allocation10]  }
 0x2fc   : > { %v1816_v59 = vsel %vm829_vm7, %v1815_v33, %v1814_v53  ;;  %v1338_v2 = vsel %vm820_vm4, %v1337_v48, %v1336_v60  ;;  %v1883_v14 = vrot.slane %v1863_v3, 2  ;;  %v1399_v27 = vrot.slane %v1384_v17, 7  ;;  %s3259_s14 = scalar_lea.hbm %s3311_s8, %s2224_s21  ;;  %s2432_s20 = sshll.u32 %s2516_s9, 4  ;;  %s2433_s20 = int_to_ptr.vmem [resolvable:$false] %s2432_s20 }
 0x2fd   : > { %v1818_v1 = vsel %vm832_vm8, %v1817_v35, %v1816_v59  ;;  %v1340_v8 = vsel %vm823_vm5, %v1339_v50, %v1338_v2  ;;  %v1401_v28 = vrot.slane %v1385_v18, 6  ;;  %v1403_v31 = vrot.slane %v1386_v22, 5  ;;  %v1985_v47 = vpop.permute.xlu1 %1984  ;;  %s2434_s26 = scalar_lea.vmem %s2433_s20, 512 }
 0x2fe   : > { %v1342_v12 = vsel %vm826_vm6, %v1341_v51, %v1340_v8  ;;  %v1405_v32 = vrot.slane %v1387_v15, 4  ;;  %v1400_v35 = vsel %vm814_vm2, %v1399_v27, %v1383_v11  ;;  %v1407_v36 = vrot.slane %v1388_v23, 3  ;;  %v2007_v51 = vpop.permute.xlu0 %2006 }
 0x2ff   : > { %1683 = vrot.lane.b32.xlu1 %v1682_v21, %s2511_s18  ;;  %v1344_v20 = vsel %vm829_vm7, %v1343_v49, %v1342_v12  ;;  %v1876_v21 = vsel %vm817_vm3, %v1875_v7, %v1874_v13  ;;  %v1402_v38 = vsel %vm817_vm3, %v1401_v28, %v1400_v35  ;;  %v1409_v39 = vrot.slane %v1389_v26, 2  ;;  %s338_s18 = scalar_lea.vmem [#allocation10], %s2195_s13 }
 0x300   : > { %v1346_v24 = vsel %vm832_vm8, %v1345_v55, %v1344_v20  ;;  %v1878_v25 = vsel %vm820_vm4, %v1877_v4, %v1876_v21  ;;  %v1404_v41 = vsel %vm820_vm4, %v1403_v31, %v1402_v38  ;;  %v1411_v42 = vrot.slane %v1390_v30, 1  ;;  %v2023_v20 = vld [vmem:[%s3309_s6] sm:$0xf] }
 0x301   : > { %v1880_v29 = vsel %vm823_vm5, %v1879_v9, %v1878_v25  ;;  %v1956_v46 = vlaneseq  ;;  %v2017_v50 = vpop.permute.xlu1 %2016  ;;  %v1987_v58 = vmul.f32 %v1985_v47, %v2986_v56  ;;  %v1988_v0 = vmul.f32 %v1985_v47, %v2992_v62 }
 0x302   : > { %v1882_v33 = vsel %vm826_vm6, %v1881_v10, %v1880_v29 }
 0x303   : > { %1751 = vrot.lane.b32.xlu1 %v1750_v43, %s2512_s19  ;;  %v1884_v37 = vsel %vm829_vm7, %v1883_v14, %v1882_v33  ;;  %v1406_v43 = vsel %vm823_vm5, %v1405_v32, %v1404_v41  ;;  %v1957_v48 = vand.u32 127, %v1956_v46  ;;  %vm3333_vm5 = vcmask 1048448   ;;  %s2105_s19 = sshll.u32 %s338_s18, 4  ;;  %s3261_s19 = int_to_ptr.vmem [resolvable:$true] %s2105_s19 }
 0x304   : > { %v1886_v40 = vsel %vm832_vm8, %v1885_v16, %v1884_v37  ;;  %v1408_v44 = vsel %vm826_vm6, %v1407_v36, %v1406_v43  ;;  %vm3334_vm6 = vmmov %vm3333_vm5  ;;  %p2435_p10 = scmp.lt.s32.totalorder %s3261_s19, %s2433_s20 }
 0x305   : > { %1887 = vrot.lane.b32.xlu0 %v1886_v40, %s2514_s17  ;;  %v1410_v45 = vsel %vm829_vm7, %v1409_v39, %v1408_v44  ;;  %vm1963_vm2 = vcmp.lt.s32.totalorder %v1957_v48, 16  ;;  %vm1966_vm3 = vcmp.ge.s32.totalorder %v1957_v48, 16  ;;  %v1958_v53 = vadd.s32 128, %v1957_v48 }
 0x306   : > { %v1412_v19 = vsel %vm832_vm8, %v1411_v42, %v1410_v45  ;;  %vm1995_vm4 = vcmp.lt.s32.totalorder %v1957_v48, 112 }
 0x307   : > { %1819 = vrot.lane.b32.xlu1 %v1818_v1, %s3332_s22  ;;  %1414 = vst.msk [vmem:[#allocation4 + $0x8] sm:$0xff] %vm386_vm1, %v1412_v19  ;;  %vm1999_vm1 = vcmp.lt.s32.totalorder %v1958_v53, 240  ;;  %s2428_s22 = scalar_lea.vmem %s3261_s19, 256 }
 0x308   : > { %p2429_p4 = scmp.ne.s32.totalorder %s3261_s19, %s2428_s22  ;;  %p2436_p13 = scmp.lt.s32.totalorder %s2434_s26, %s2428_s22 }
 0x30a   : > { %p2430_p6 = pnand %p2429_p4, %p2653_p12  ;;  %p2437_p3 = por %p2436_p13, %p2435_p10 }
 0x30b   : > { %1347 = vrot.lane.b32.xlu1 %v1346_v24, %s2514_s17 }
 0x30c   : > { %p2431_p8 = pneg %p2430_p6 }
 0x30e   : > { %p2438_p7 = pnand %p2437_p3, %p2431_p8 }
 0x346   : > { %v1960_v52 = vpop.permute.xlu1 %1959 }
 0x347   : > { %v1962_v54 = vpop.permute.xlu0 %1961 }
 0x348   : > { %v1964_v49 = vsel %vm1963_vm2, %v1960_v52, %v1962_v54  ;;  %v1965_v55 = vsel %vm1963_vm2, %v1962_v54, %v1960_v52 }
 0x349   : > { %v1968_v57 = vsel %vm1966_vm3, %v1965_v55, 0.0  ;;  %v1977_v60 = vmul.f32 %v1974_v34, %v1964_v49 }
 0x34a   : > { %v1976_v59 = vmul.f32 %v1974_v34, %v1968_v57  ;;  %v1994_v61 = vpop.permute.xlu1 %1993 }
 0x34b   : > { %v1992_v63 = vpop.permute.xlu0 %1991  ;;  %v1990_v7 = vadd.f32 %v1988_v0, %v1977_v60 }
 0x34c   : > { %v1989_v1 = vadd.f32 %v1987_v58, %v1976_v59  ;;  %v1996_v2 = vsel %vm1995_vm4, %v1992_v63, %v1994_v61  ;;  %v1997_v3 = vsel %vm1995_vm4, %v1994_v61, %v1992_v63 }
 0x34d   : > { %v2001_v5 = vsel %vm1999_vm1, %v1997_v3, 0.0  ;;  %v2009_v6 = vmul.f32 %v2007_v51, %v1996_v2 }
 0x34e   : > { %v2010_v8 = vmul.f32 %v2007_v51, %v2001_v5 }
 0x34f   : > { %v2011_v4 = vadd.f32 %v2009_v6, %v1989_v1  ;;  %v934_v9 = vpop.permute.xlu0 %933 }
 0x350   : > { %v2012_v10 = vadd.f32 %v2010_v8, %v1990_v7  ;;  %936 = vst.msk [vmem:[#allocation4] sm:$0xff] %vm901_vm9, %v934_v9 }
 0x351   : > { %v2019_v56 = vadd.f32 %v2017_v50, %v2011_v4 }
 0x352   : > { %v2020_v11 = vadd.f32 %v2017_v50, %v2012_v10 }
 0x353   : > { %v2021_v12 = vmax.f32 %v2019_v56, 0.0  ;;  %v1003_v13 = vpop.permute.xlu0 %1002 }
 0x354   : > { %v2022_v14 = vmax.f32 %v2020_v11, 0.0  ;;  %1005 = vst.msk [vmem:[#allocation4] sm:$0xff] %vm970_vm10, %v1003_v13 }
 0x355   : > { %v2024_v62 = vpack.c.bf16 %v2021_v12, %v2021_v12 }
 0x356   : > { %v2025_v16 = vpack.c.bf16 %v2022_v14, %v2022_v14 }
 0x357   : > { %v2036_v17 = vsel %vm1906_vm0, %v2024_v62, 0  ;;  %v1072_v18 = vpop.permute.xlu0 %1071 }
 0x358   : > { %2216 = vmatprep.subr.msk.bf16.mxu1 %vm1906_vm0, %v2025_v16  ;;  %1074 = vst.msk [vmem:[#allocation4] sm:$0xff] %vm1039_vm11, %v1072_v18 }
 0x359   : > { %2042 = vmatpush1.bf16.msra.mxu1 %v2036_v17 }
 0x35b   : > { %v1141_v21 = vpop.permute.xlu0 %1140  ;;  %v1480_v23 = vpop.permute.xlu1 %1479 }
 0x35c   : > { %2217 = vmatmul.mubr.msk.bf16.vlgmr.msra.gmra.mrb[16].mxu1 %vm1902_vm15, %v2023_v20  ;;  %1143 = vst.msk [vmem:[#allocation4] sm:$0xff] %vm1108_vm12, %v1141_v21 }
 0x35d   : > { %1482 = vst.msk [vmem:[#allocation4 + $0x8] sm:$0xff] %vm901_vm9, %v1480_v23 }
 0x35f   : > { %v1210_v22 = vpop.permute.xlu0 %1209 }
 0x360   : > { %1212 = vst.msk [vmem:[#allocation4] sm:$0xff] %vm1177_vm13, %v1210_v22 }
 0x363   : > { %v1279_v15 = vpop.permute.xlu0 %1278 }
 0x364   : > { %1281 = vst.msk [vmem:[#allocation4] sm:$0xff] %vm1246_vm14, %v1279_v15 }
 0x369   : > { %v1548_v24 = vpop.permute.xlu1 %1547 }
 0x36a   : > { %1550 = vst.msk [vmem:[#allocation4 + $0x8] sm:$0xff] %vm970_vm10, %v1548_v24 }
 0x36d   : > { %v1616_v25 = vpop.permute.xlu1 %1615 }
 0x36e   : > { %1618 = vst.msk [vmem:[#allocation4 + $0x8] sm:$0xff] %vm1039_vm11, %v1616_v25 }
 0x371   : > { %v1684_v26 = vpop.permute.xlu1 %1683 }
 0x372   : > { %1686 = vst.msk [vmem:[#allocation4 + $0x8] sm:$0xff] %vm1108_vm12, %v1684_v26 }
 0x374   : > { %v2030_v29 = vpop.permute.xlu0 %2029 }
 0x375   : > { %v1752_v27 = vpop.permute.xlu1 %1751 }
 0x376   : > { %1754 = vst.msk [vmem:[#allocation4 + $0x8] sm:$0xff] %vm1177_vm13, %v1752_v27 }
 0x378   : > { %v1888_v31 = vpop.permute.xlu0 %1887 }
 0x379   : > { %v1820_v28 = vpop.permute.xlu1 %1819 }
 0x37a   : > { %1822 = vst.msk [vmem:[#allocation4 + $0x8] sm:$0xff] %vm1246_vm14, %v1820_v28 }
 0x37b   : > { %1890 = vst.msk [vmem:[#allocation4 + $0x8] sm:$0xff] %vm3334_vm6, %v1888_v31 }
 0x37d   : > { %v1348_v30 = vpop.permute.xlu1 %1347 }
 0x37e   : > { %1350 = vst.msk [vmem:[#allocation4] sm:$0xff] %vm3333_vm5, %v1348_v30 }
 0x382   : > { %v2083_v37 = vld [vmem:[#allocation4 + $0x8] sm:$0xff] }
 0x385   : > { %v2082_v33 = vld [vmem:[#allocation4] sm:$0xff] }
 0x42f   : > { %v2075_v32 = vpop.f32.mrb[16].mxu1 }
 0x430   : > { %v2076_v35 = vadd.f32 %v2075_v32, %v2030_v29  ;;  %v2077_v36 = vpop.f32.mrb[17].mxu1 }
 0x431   : > { %v2078_v38 = vadd.f32 %v2077_v36, %v2030_v29  ;;  %v2079_v39 = vpop.f32.mrb[18].mxu1 }
 0x432   : > { %v2084_v40 = vadd.f32 %v2082_v33, %v2076_v35  ;;  %v2080_v41 = vpop.f32.mrb[19].mxu1 }
 0x433   : > { %v2085_v42 = vadd.f32 %v2083_v37, %v2078_v38 }
 0x434   : > { %v2086_v43 = vmax.f32 %v2084_v40, 0.0 }
 0x435   : > { %v2087_v44 = vmax.f32 %v2085_v42, 0.0 }
 0x436   : > { %2088 = vst [vmem:[%s338_s18] sm:$0xff] %v2086_v43 }
 0x437   : > { %2089 = vst [vmem:[%s338_s18 + $0x8] sm:$0xff] %v2087_v44 }
 0x438   : > { %2441 = shalt.err (!%p2438_p7)
}
 0x439   : > { %s2442_s10 = scalar_lea.hbm %s3259_s14, 256  ;;  %s2446_s13 = scalar_lea.hbm %s3311_s8, 512 }
 0x43a   : > { %p2443_p9 = scmp.ne.s32.totalorder %s3259_s14, %s2442_s10  ;;  %p2447_p5 = scmp.lt.u32.totalorder %s3259_s14, %s3311_s8 }
 0x43b   : > { %p2448_p11 = scmp.lt.u32.totalorder %s2446_s13, %s2442_s10  ;;  %p2450_p4 = scmp.lt.u32.totalorder %s2442_s10, %s3259_s14 }
 0x43c   : > { %p2444_p2 = pnand %p2443_p9, %p2653_p12 }
 0x43d   : > { %p2449_p1 = por %p2448_p11, %p2447_p5 }
 0x43e   : > { %p2445_p0 = pneg %p2444_p2 }
 0x43f   : > { %p2451_p6 = por %p2450_p4, %p2449_p1 }
 0x441   : > { %p2452_p8 = pnand %p2451_p6, %p2445_p0 }
 0x443   : > { %2455 = shalt.err (!%p2452_p8)
}
 0x444   : > { %2295 = dma.vmem_to_hbm [thread:$0]  (%p2653_p12), %s3261_s19, 256, %s3259_s14, %s2091_s25  }
 0x445 PF: > { %s2117_s17 = sand.u32 1, %s2486_s27   ;;  %p3335_p10 = scmp.ne.s32.totalorder %s3321_s12, 0 }
 0x446   : > { %p3336_p13 = scmp.ge.s32.totalorder %s2498_s30, 2  ;;  %s2118_s16 = scalar_lea.sflag [#allocation7], %s2117_s17 }
 0x448   : > { %p2306_p3 = pnand %p3336_p13, %p3335_p10 }
 0x44a   : > { %2481 = dma.done.wait (!%p2306_p3), %s2118_s16, 256  }
 0x44b   : > { %2483 = vsyncadd (!%p2306_p3), %s2118_s16, 4294967040  ;;  %s3337_s30 = sld [smem:[#allocation14_spill]]  ;;  %s3338_s27 = smov %s2490_s28 }
 0x44c   : > { %s3339_s28 = smov %s2494_s29  ;;  %s3340_s29 = smov %s2649_s23 }
 0x451   : > { %p22_p7 = scmp.ge.s32.totalorder %s3337_s30, 4  }
 0x453   :  { %24 = sbr.rel (!%p22_p7) target bundleno = 6 (0x6), region = 103 }
 0x45a   :  { %2123 = vsyncpa [#allocation6], 1 }
 0x45b   :  { %2125 = vsyncpa [#allocation6 + $0x1], 1 }
 0x45c   :  { %2126 = vsyncpa [#allocation9], 1 }
 0x45d   :  { %2127 = vsyncpa [#allocation7], 1 }
 0x45e   :  { %2129 = vsyncpa [#allocation7 + $0x1], 1 }

</bundles_post_ra>
